<compile_context>
chip_gen: v7x
topology: tpu7x:2x2x1
jax: 0.10.0
libtpu: 0.0.40
codegen_flags: <defaults>
</compile_context>

<pallas_src>
import jax
import jax.numpy as jnp
from jax import lax
from jax.experimental import pallas as pl
from jax.experimental.pallas import tpu as pltpu


def _round_up(v, m):
    return ((v + m - 1) // m) * m


def _tpu_defaults():
    """Generation-aware defaults: MXU-width Cout tile and VMEM budget."""
    kind = ""
    try:
        kind = jax.devices()[0].device_kind.lower()
    except Exception:
        pass
    is_v5e = ("v5 lite" in kind) or ("v5e" in kind) or ("v5lite" in kind)
    mxu_tn = 128 if is_v5e else 256            # v5e MXU is 128-wide; v6e/v7x are 256-wide
    vmem_cap = None
    try:
        vmem_cap = int(pltpu.get_tpu_info().vmem_capacity_bytes)
    except Exception:
        vmem_cap = None
    if not vmem_cap:
        vmem_cap = 64 * 1024 * 1024            # conservative fallback: v7x physical VMEM
    # ~25% headroom; never ask for more than ~100 MiB even on 128 MiB parts
    vmem_limit = min((vmem_cap * 3) // 4, 100 * 1024 * 1024)
    return mxu_tn, vmem_limit


def _downsample_conv_kernel(x_ref, w_ref, b_ref, o_ref, lhs_ref):
    """One image x one Cout tile per grid step.

    x_ref  : (4, 1, Ho+1, Wo+1, Cp)   stride-2 phase-split, padded input (one image)
    w_ref  : (9*Cp, TN)               weight tile, rows ordered (ky, kx, cin)
    b_ref  : (1, TN) f32              bias tile
    o_ref  : (1, Mp, TN)              output tile (lane-dense: TN multiple of 128)
    lhs_ref: (Mp, 9*Cp)               VMEM im2col staging buffer (compute dtype)
    """
    ho = x_ref.shape[2] - 1
    wo = x_ref.shape[3] - 1
    cp = x_ref.shape[4]
    m = ho * wo
    m_pad = lhs_ref.shape[0]

    # Build the (m, 9*Cp) im2col lhs once per grid step: each input element is copied exactly
    # once and every store lands at a lane offset that is a multiple of 128.
    for ky in range(3):
        for kx in range(3):
            p = (ky % 2) * 2 + (kx % 2)        # which stride-2 phase
            dy, dx = ky // 2, kx // 2          # +0/+1 shift inside that phase
            t = ky * 3 + kx
            lhs_ref[0:m, t * cp:(t + 1) * cp] = (
                x_ref[p, 0, dy:dy + ho, dx:dx + wo, :].reshape(m, cp))
    if m_pad != m:                             # keep pad rows finite (sliced off by wrapper)
        lhs_ref[m:m_pad, :] = jnp.zeros((m_pad - m, lhs_ref.shape[1]), lhs_ref.dtype)

    # Single deep-K matmul: full MXU contraction depth, one issue/drain, accumulation stays in
    # the MXU result path (MRB on v7x) -> no per-tap VMEM read-modify-write.
    acc = jnp.dot(lhs_ref[...], w_ref[...], preferred_element_type=jnp.float32)

    # Epilogue: single f32 bias add + cast + lane-dense store.
    o_ref[0] = (acc + b_ref[...]).astype(o_ref.dtype)


def _downsample_core(phases, w_mat, b_mat, out_dtype, *, tn=None):
    """phases (4, N, Ho+1, Wo+1, Cin_p); w_mat (9*Cin_p, Cout_p); b_mat (1, Cout_p) f32."""
    _, n, hop1, wop1, cin_p = phases.shape
    ho, wo = hop1 - 1, wop1 - 1
    k9, cout_p = w_mat.shape
    m = ho * wo
    m_pad = _round_up(m, 8)
    act_isz = phases.dtype.itemsize
    out_isz = jnp.dtype(out_dtype).itemsize

    gen_tn, vmem_limit = _tpu_defaults()

    def vmem_bytes(tile_n):
        return (2 * 4 * hop1 * wop1 * cin_p * act_isz     # phase block, double-buffered
                + 2 * k9 * tile_n * act_isz               # weight tile, double-buffered
                + 2 * tile_n * 4                          # bias tile
                + 2 * m_pad * tile_n * out_isz            # output tile, double-buffered
                + m_pad * k9 * act_isz)                   # im2col staging scratch

    if tn is None:
        # Prefer a single resident Cout tile (weight fetched exactly once, grid (N, 1)); else
        # the MXU-native width, else 128 -- first candidate that fits the VMEM budget.
        candidates = [c for c in (cout_p, gen_tn, 128) if c <= cout_p and cout_p % c == 0]
        tn = candidates[-1]
        for c in candidates:
            if vmem_bytes(c) <= vmem_limit:
                tn = c
                break
        # Keep >= 2 independent blocks for dual-TensorCore chips (v7x) on batch-1 inputs.
        if n == 1 and cout_p // tn < 2 and cout_p >= 256 and (cout_p // 2) % 128 == 0:
            tn = cout_p // 2
    tn = min(tn, cout_p)
    assert cout_p % tn == 0
    num_j = cout_p // tn
    # TODO(synk): if vmem_bytes(tn) still exceeds the budget (huge per-image spatial extents on
    # v7x), add the row-tiled halo variant instead of relying on the compiler limit.

    # Grid-order selection: put whichever axis causes less re-fetched HBM traffic on the
    # inside.  batch-outer -> phases fetched once/image, weight refetched per image;
    # cout-tile-outer -> weight fetched once/tile, phases refetched per tile.
    weight_bytes = k9 * cout_p * act_isz
    phase_block_bytes = 4 * hop1 * wop1 * cin_p * act_isz
    batch_outer = (num_j == 1) or ((n - 1) * weight_bytes <= (num_j - 1) * n * phase_block_bytes)
    if batch_outer:
        grid = (n, num_j)
        x_map = lambda b, j: (0, b, 0, 0, 0)
        w_map = lambda b, j: (0, j)
        s_map = lambda b, j: (0, j)
        o_map = lambda b, j: (b, 0, j)
    else:
        grid = (num_j, n)
        x_map = lambda j, b: (0, b, 0, 0, 0)
        w_map = lambda j, b: (0, j)
        s_map = lambda j, b: (0, j)
        o_map = lambda j, b: (b, 0, j)

    flops = 2 * n * m_pad * k9 * cout_p
    bytes_accessed = (phases.size * act_isz + w_mat.size * act_isz
                      + b_mat.size * b_mat.dtype.itemsize
                      + n * m_pad * cout_p * out_isz)

    out_flat = pl.pallas_call(
        _downsample_conv_kernel,
        out_shape=jax.ShapeDtypeStruct((n, m_pad, cout_p), out_dtype),
        grid_spec=pltpu.PrefetchScalarGridSpec(
            num_scalar_prefetch=0,
            grid=grid,
            in_specs=[
                pl.BlockSpec((4, 1, hop1, wop1, cin_p), x_map),
                pl.BlockSpec((k9, tn), w_map),
                pl.BlockSpec((1, tn), s_map),
            ],
            out_specs=pl.BlockSpec((1, m_pad, tn), o_map),
            scratch_shapes=[pltpu.VMEM((m_pad, k9), phases.dtype)],
        ),
        compiler_params=pltpu.CompilerParams(
            dimension_semantics=("parallel", "parallel"),
            vmem_limit_bytes=int(vmem_limit),
        ),
        cost_estimate=pl.CostEstimate(
            flops=flops, transcendentals=0, bytes_accessed=bytes_accessed),
    )(phases, w_mat, b_mat)

    return out_flat[:, :m, :].reshape(n, ho, wo, cout_p)


def _prep_weight_bias(weight, bias, cin_p, cout_p, compute_dtype):
    """weight (Cout, Cin, 3, 3) torch OIHW -> (9*Cin_p, Cout_p) with rows (ky, kx, cin)."""
    cout, cin = weight.shape[0], weight.shape[1]
    w_pad = jnp.pad(weight, ((0, cout_p - cout), (0, cin_p - cin), (0, 0), (0, 0)))
    w_mat = w_pad.transpose(2, 3, 1, 0).reshape(9 * cin_p, cout_p).astype(compute_dtype)
    b_mat = jnp.pad(bias.astype(jnp.float32), (0, cout_p - cout)).reshape(1, cout_p)
    return w_mat, b_mat


def downsample_pallas_nhwc(x, weight, bias, *, tn=None, compute_dtype=jnp.bfloat16):
    """NHWC fast path: x (N, H, W, Cin); weight (Cout, Cin, 3, 3); bias (Cout,).
    Returns (N, Ho, Wo, Cout) with stride-2 / pad-1 Conv2d semantics."""
    n, h, w, cin = x.shape
    cout = weight.shape[0]
    out_dtype = x.dtype
    cdt = x.dtype if compute_dtype is None else compute_dtype
    ho, wo = (h - 1) // 2 + 1, (w - 1) // 2 + 1
    cin_p, cout_p = _round_up(cin, 128), _round_up(cout, 128)

    hp, wp = 2 * ho + 2, 2 * wo + 2
    xp = jnp.pad(x.astype(cdt), ((0, 0), (1, hp - 1 - h), (1, wp - 1 - w), (0, cin_p - cin)))
    phases = (xp.reshape(n, ho + 1, 2, wo + 1, 2, cin_p)
                .transpose(2, 4, 0, 1, 3, 5)
                .reshape(4, n, ho + 1, wo + 1, cin_p))
    w_mat, b_mat = _prep_weight_bias(weight, bias, cin_p, cout_p, cdt)
    out = _downsample_core(phases, w_mat, b_mat, out_dtype, tn=tn)
    return out[..., :cout] if cout_p != cout else out


def downsample_pallas(x, weight, bias, temb=None, *, tn=None, compute_dtype=jnp.bfloat16):
    """NCHW wrapper matching the PyTorch module's forward(x, temb); temb is ignored.
    Pad + phase-split transpose are fused straight from NCHW (no NHWC intermediate)."""
    del temb  # unused by DownSample.forward, kept for API parity
    n, cin, h, w = x.shape
    cout = weight.shape[0]
    out_dtype = x.dtype
    cdt = x.dtype if compute_dtype is None else compute_dtype
    ho, wo = (h - 1) // 2 + 1, (w - 1) // 2 + 1
    cin_p, cout_p = _round_up(cin, 128), _round_up(cout, 128)

    hp, wp = 2 * ho + 2, 2 * wo + 2
    xp = jnp.pad(x.astype(cdt), ((0, 0), (0, 0), (1, hp - 1 - h), (1, wp - 1 - w)))
    phases = (xp.reshape(n, cin, ho + 1, 2, wo + 1, 2)
                .transpose(3, 5, 0, 2, 4, 1)                 # (py, px, n, Ho+1, Wo+1, cin)
                .reshape(4, n, ho + 1, wo + 1, cin))
    phases = jnp.pad(phases, ((0, 0),) * 4 + ((0, cin_p - cin),))
    w_mat, b_mat = _prep_weight_bias(weight, bias, cin_p, cout_p, cdt)
    out = _downsample_core(phases, w_mat, b_mat, out_dtype, tn=tn)   # (n, ho, wo, cout_p)
    out = out[..., :cout] if cout_p != cout else out
    return jnp.transpose(out, (0, 3, 1, 2))


def init_downsample_params(key, in_ch, dtype=jnp.float32):
    """Deterministic xavier_uniform_ weight (fan_in = fan_out = in_ch*9), zero bias."""
    fan = in_ch * 3 * 3
    bound = (6.0 / (fan + fan)) ** 0.5
    weight = jax.random.uniform(key, (in_ch, in_ch, 3, 3), dtype, minval=-bound, maxval=bound)
    bias = jnp.zeros((in_ch,), dtype)
    return weight, bias


if __name__ == "__main__":
    key = jax.random.PRNGKey(0)
    kx, kw, kt = jax.random.split(key, 3)

    # --- main config (matches the torch module call signature) ---
    n, c, h, w = 2, 4, 16, 16
    x = jax.random.normal(kx, (n, c, h, w), jnp.float32)
    temb = jax.random.normal(kt, (n, 32), jnp.float32)   # unused by DownSample.forward
    weight, bias = init_downsample_params(kw, c)

    ref = lax.conv_general_dilated(
        x, weight, window_strides=(2, 2), padding=((1, 1), (1, 1)),
        dimension_numbers=("NCHW", "OIHW", "NCHW")) + bias.reshape(1, c, 1, 1)

    # default path: bf16 MXU inputs, f32 accumulator
    out_bf16 = jax.block_until_ready(downsample_pallas(x, weight, bias, temb))
    assert out_bf16.shape == (n, c, h // 2, w // 2)
    assert jnp.allclose(out_bf16, ref, atol=5e-2, rtol=5e-2), \
        float(jnp.max(jnp.abs(out_bf16 - ref)))

    # exact f32 path
    out_f32 = jax.block_until_ready(
        downsample_pallas(x, weight, bias, temb, compute_dtype=None))
    assert jnp.allclose(out_f32, ref, atol=1e-4, rtol=1e-4), \
        float(jnp.max(jnp.abs(out_f32 - ref)))

    # multi-Cout-tile config: exercises the resident-weight / grid-order logic
    c2, h2, w2 = 160, 8, 8
    x2 = jax.random.normal(kx, (2, c2, h2, w2), jnp.float32)
    w2_, b2_ = init_downsample_params(kw, c2)
    ref2 = lax.conv_general_dilated(
        x2, w2_, window_strides=(2, 2), padding=((1, 1), (1, 1)),
        dimension_numbers=("NCHW", "OIHW", "NCHW")) + b2_.reshape(1, c2, 1, 1)
    out2 = jax.block_until_ready(
        downsample_pallas(x2, w2_, b2_, None, tn=128, compute_dtype=None))
    assert jnp.allclose(out2, ref2, atol=1e-4, rtol=1e-4), \
        float(jnp.max(jnp.abs(out2 - ref2)))

    print("KERNEL_OK")
</pallas_src>

<mosaic_0001>
module attributes {stable_mosaic.version = 11 : i64} {
  func.func @_downsample_conv_kernel(%arg0: i32, %arg1: i32, %arg2: memref<4x1x9x9x128xbf16, #tpu.memory_space<vmem>>, %arg3: memref<1152x128xbf16, #tpu.memory_space<vmem>>, %arg4: memref<1x128xf32, #tpu.memory_space<vmem>>, %arg5: memref<1x64x128xf32, #tpu.memory_space<vmem>>, %arg6: memref<64x1152xbf16, #tpu.memory_space<vmem>>) attributes {dimension_semantics = [#tpu.dimension_semantics<parallel>, #tpu.dimension_semantics<parallel>], iteration_bounds = array<i64: 2, 1>, scalar_prefetch = 0 : i64, scratch_operands = 1 : i64, tpu.core_type = #tpu.core_type<tc>, window_params = [{transform_indices = @transform_0, window_bounds = array<i64: 4, 1, 9, 9, 128>}, {transform_indices = @transform_1, window_bounds = array<i64: 1152, 128>}, {transform_indices = @transform_2, window_bounds = array<i64: 1, 128>}, {transform_indices = @transform_3, window_bounds = array<i64: 1, 64, 128>}]} {
    %c0 = arith.constant 0 : index
    %c0_0 = arith.constant 0 : index
    %c0_1 = arith.constant 0 : index
    %c0_2 = arith.constant 0 : index
    %c0_3 = arith.constant 0 : index
    %0 = vector.load %arg2[%c0, %c0_0, %c0_1, %c0_2, %c0_3] : memref<4x1x9x9x128xbf16, #tpu.memory_space<vmem>>, vector<1x1x8x8x128xbf16>
    %1 = vector.shape_cast %0 : vector<1x1x8x8x128xbf16> to vector<8x8x128xbf16>
    %2 = vector.shape_cast %1 : vector<8x8x128xbf16> to vector<64x128xbf16>
    %c0_4 = arith.constant 0 : index
    %c0_5 = arith.constant 0 : index
    %3 = vector.load %arg6[%c0_4, %c0_5] : memref<64x1152xbf16, #tpu.memory_space<vmem>>, vector<64x128xbf16>
    tpu.vector_store %arg6[%c0_4, %c0_5], %2 {strides = array<i32>} : memref<64x1152xbf16, #tpu.memory_space<vmem>>, vector<64x128xbf16>,
    %c1 = arith.constant 1 : index
    %c0_6 = arith.constant 0 : index
    %c0_7 = arith.constant 0 : index
    %c0_8 = arith.constant 0 : index
    %c0_9 = arith.constant 0 : index
    %4 = vector.load %arg2[%c1, %c0_6, %c0_7, %c0_8, %c0_9] : memref<4x1x9x9x128xbf16, #tpu.memory_space<vmem>>, vector<1x1x8x8x128xbf16>
    %5 = vector.shape_cast %4 : vector<1x1x8x8x128xbf16> to vector<8x8x128xbf16>
    %6 = vector.shape_cast %5 : vector<8x8x128xbf16> to vector<64x128xbf16>
    %c0_10 = arith.constant 0 : index
    %c128 = arith.constant 128 : index
    %7 = vector.load %arg6[%c0_10, %c128] : memref<64x1152xbf16, #tpu.memory_space<vmem>>, vector<64x128xbf16>
    tpu.vector_store %arg6[%c0_10, %c128], %6 {strides = array<i32>} : memref<64x1152xbf16, #tpu.memory_space<vmem>>, vector<64x128xbf16>,
    %c0_11 = arith.constant 0 : index
    %c0_12 = arith.constant 0 : index
    %c0_13 = arith.constant 0 : index
    %c1_14 = arith.constant 1 : index
    %c0_15 = arith.constant 0 : index
    %8 = vector.load %arg2[%c0_11, %c0_12, %c0_13, %c1_14, %c0_15] : memref<4x1x9x9x128xbf16, #tpu.memory_space<vmem>>, vector<1x1x8x8x128xbf16>
    %9 = vector.shape_cast %8 : vector<1x1x8x8x128xbf16> to vector<8x8x128xbf16>
    %10 = vector.shape_cast %9 : vector<8x8x128xbf16> to vector<64x128xbf16>
    %c0_16 = arith.constant 0 : index
    %c256 = arith.constant 256 : index
    %11 = vector.load %arg6[%c0_16, %c256] : memref<64x1152xbf16, #tpu.memory_space<vmem>>, vector<64x128xbf16>
    tpu.vector_store %arg6[%c0_16, %c256], %10 {strides = array<i32>} : memref<64x1152xbf16, #tpu.memory_space<vmem>>, vector<64x128xbf16>,
    %c2 = arith.constant 2 : index
    %c0_17 = arith.constant 0 : index
    %c0_18 = arith.constant 0 : index
    %c0_19 = arith.constant 0 : index
    %c0_20 = arith.constant 0 : index
    %12 = vector.load %arg2[%c2, %c0_17, %c0_18, %c0_19, %c0_20] : memref<4x1x9x9x128xbf16, #tpu.memory_space<vmem>>, vector<1x1x8x8x128xbf16>
    %13 = vector.shape_cast %12 : vector<1x1x8x8x128xbf16> to vector<8x8x128xbf16>
    %14 = vector.shape_cast %13 : vector<8x8x128xbf16> to vector<64x128xbf16>
    %c0_21 = arith.constant 0 : index
    %c384 = arith.constant 384 : index
    %15 = vector.load %arg6[%c0_21, %c384] : memref<64x1152xbf16, #tpu.memory_space<vmem>>, vector<64x128xbf16>
    tpu.vector_store %arg6[%c0_21, %c384], %14 {strides = array<i32>} : memref<64x1152xbf16, #tpu.memory_space<vmem>>, vector<64x128xbf16>,
    %c3 = arith.constant 3 : index
    %c0_22 = arith.constant 0 : index
    %c0_23 = arith.constant 0 : index
    %c0_24 = arith.constant 0 : index
    %c0_25 = arith.constant 0 : index
    %16 = vector.load %arg2[%c3, %c0_22, %c0_23, %c0_24, %c0_25] : memref<4x1x9x9x128xbf16, #tpu.memory_space<vmem>>, vector<1x1x8x8x128xbf16>
    %17 = vector.shape_cast %16 : vector<1x1x8x8x128xbf16> to vector<8x8x128xbf16>
    %18 = vector.shape_cast %17 : vector<8x8x128xbf16> to vector<64x128xbf16>
    %c0_26 = arith.constant 0 : index
    %c512 = arith.constant 512 : index
    %19 = vector.load %arg6[%c0_26, %c512] : memref<64x1152xbf16, #tpu.memory_space<vmem>>, vector<64x128xbf16>
    tpu.vector_store %arg6[%c0_26, %c512], %18 {strides = array<i32>} : memref<64x1152xbf16, #tpu.memory_space<vmem>>, vector<64x128xbf16>,
    %c2_27 = arith.constant 2 : index
    %c0_28 = arith.constant 0 : index
    %c0_29 = arith.constant 0 : index
    %c1_30 = arith.constant 1 : index
    %c0_31 = arith.constant 0 : index
    %20 = vector.load %arg2[%c2_27, %c0_28, %c0_29, %c1_30, %c0_31] : memref<4x1x9x9x128xbf16, #tpu.memory_space<vmem>>, vector<1x1x8x8x128xbf16>
    %21 = vector.shape_cast %20 : vector<1x1x8x8x128xbf16> to vector<8x8x128xbf16>
    %22 = vector.shape_cast %21 : vector<8x8x128xbf16> to vector<64x128xbf16>
    %c0_32 = arith.constant 0 : index
    %c640 = arith.constant 640 : index
    %23 = vector.load %arg6[%c0_32, %c640] : memref<64x1152xbf16, #tpu.memory_space<vmem>>, vector<64x128xbf16>
    tpu.vector_store %arg6[%c0_32, %c640], %22 {strides = array<i32>} : memref<64x1152xbf16, #tpu.memory_space<vmem>>, vector<64x128xbf16>,
    %c0_33 = arith.constant 0 : index
    %c0_34 = arith.constant 0 : index
    %c1_35 = arith.constant 1 : index
    %c0_36 = arith.constant 0 : index
    %c0_37 = arith.constant 0 : index
    %24 = vector.load %arg2[%c0_33, %c0_34, %c1_35, %c0_36, %c0_37] : memref<4x1x9x9x128xbf16, #tpu.memory_space<vmem>>, vector<1x1x8x8x128xbf16>
    %25 = vector.shape_cast %24 : vector<1x1x8x8x128xbf16> to vector<8x8x128xbf16>
    %26 = vector.shape_cast %25 : vector<8x8x128xbf16> to vector<64x128xbf16>
    %c0_38 = arith.constant 0 : index
    %c768 = arith.constant 768 : index
    %27 = vector.load %arg6[%c0_38, %c768] : memref<64x1152xbf16, #tpu.memory_space<vmem>>, vector<64x128xbf16>
    tpu.vector_store %arg6[%c0_38, %c768], %26 {strides = array<i32>} : memref<64x1152xbf16, #tpu.memory_space<vmem>>, vector<64x128xbf16>,
    %c1_39 = arith.constant 1 : index
    %c0_40 = arith.constant 0 : index
    %c1_41 = arith.constant 1 : index
    %c0_42 = arith.constant 0 : index
    %c0_43 = arith.constant 0 : index
    %28 = vector.load %arg2[%c1_39, %c0_40, %c1_41, %c0_42, %c0_43] : memref<4x1x9x9x128xbf16, #tpu.memory_space<vmem>>, vector<1x1x8x8x128xbf16>
    %29 = vector.shape_cast %28 : vector<1x1x8x8x128xbf16> to vector<8x8x128xbf16>
    %30 = vector.shape_cast %29 : vector<8x8x128xbf16> to vector<64x128xbf16>
    %c0_44 = arith.constant 0 : index
    %c896 = arith.constant 896 : index
    %31 = vector.load %arg6[%c0_44, %c896] : memref<64x1152xbf16, #tpu.memory_space<vmem>>, vector<64x128xbf16>
    tpu.vector_store %arg6[%c0_44, %c896], %30 {strides = array<i32>} : memref<64x1152xbf16, #tpu.memory_space<vmem>>, vector<64x128xbf16>,
    %c0_45 = arith.constant 0 : index
    %c0_46 = arith.constant 0 : index
    %c1_47 = arith.constant 1 : index
    %c1_48 = arith.constant 1 : index
    %c0_49 = arith.constant 0 : index
    %32 = vector.load %arg2[%c0_45, %c0_46, %c1_47, %c1_48, %c0_49] : memref<4x1x9x9x128xbf16, #tpu.memory_space<vmem>>, vector<1x1x8x8x128xbf16>
    %33 = vector.shape_cast %32 : vector<1x1x8x8x128xbf16> to vector<8x8x128xbf16>
    %34 = vector.shape_cast %33 : vector<8x8x128xbf16> to vector<64x128xbf16>
    %c0_50 = arith.constant 0 : index
    %c1024 = arith.constant 1024 : index
    %35 = vector.load %arg6[%c0_50, %c1024] : memref<64x1152xbf16, #tpu.memory_space<vmem>>, vector<64x128xbf16>
    tpu.vector_store %arg6[%c0_50, %c1024], %34 {strides = array<i32>} : memref<64x1152xbf16, #tpu.memory_space<vmem>>, vector<64x128xbf16>,
    %c0_51 = arith.constant 0 : index
    %c0_52 = arith.constant 0 : index
    %36 = vector.load %arg6[%c0_51, %c0_52] : memref<64x1152xbf16, #tpu.memory_space<vmem>>, vector<64x1152xbf16>
    %c0_53 = arith.constant 0 : index
    %c0_54 = arith.constant 0 : index
    %37 = vector.load %arg3[%c0_53, %c0_54] : memref<1152x128xbf16, #tpu.memory_space<vmem>>, vector<1152x128xbf16>
    %cst = arith.constant dense<0.000000e+00> : vector<64x128xf32>
    %38 = tpu.matmul %36, %37, %cst {dimension_numbers = #tpu.dot_dimension_numbers<[1], [0], [0], [1], [0, 0, 1, 1], [], []>} : vector<64x1152xbf16>, vector<1152x128xbf16>, vector<64x128xf32> -> vector<64x128xf32>
    %c0_55 = arith.constant 0 : index
    %c0_56 = arith.constant 0 : index
    %39 = vector.load %arg4[%c0_55, %c0_56] : memref<1x128xf32, #tpu.memory_space<vmem>>, vector<1x128xf32>
    %40 = vector.broadcast %39 : vector<1x128xf32> to vector<64x128xf32>
    %41 = arith.addf %38, %40 : vector<64x128xf32>
    %c0_57 = arith.constant 0 : index
    %c0_58 = arith.constant 0 : index
    %c0_59 = arith.constant 0 : index
    %42 = vector.load %arg5[%c0_57, %c0_58, %c0_59] : memref<1x64x128xf32, #tpu.memory_space<vmem>>, vector<1x64x128xf32>
    %43 = vector.shape_cast %42 : vector<1x64x128xf32> to vector<64x128xf32>
    %44 = vector.shape_cast %41 : vector<64x128xf32> to vector<1x64x128xf32>
    tpu.vector_store %arg5[%c0_57, %c0_58, %c0_59], %44 {strides = array<i32>} : memref<1x64x128xf32, #tpu.memory_space<vmem>>, vector<1x64x128xf32>,
    return
  }
  func.func @transform_0(%arg0: i32, %arg1: i32) -> (i32, i32, i32, i32, i32) {
    %c0_i32 = arith.constant 0 : i32
    %c0_i32_0 = arith.constant 0 : i32
    %c0_i32_1 = arith.constant 0 : i32
    %c0_i32_2 = arith.constant 0 : i32
    %c0_i32_3 = arith.constant 0 : i32
    return %c0_i32, %arg0, %c0_i32_0, %c0_i32_1, %c0_i32_2 : i32, i32, i32, i32, i32
  }
  func.func @transform_1(%arg0: i32, %arg1: i32) -> (i32, i32) {
    %c0_i32 = arith.constant 0 : i32
    %c0_i32_0 = arith.constant 0 : i32
    return %c0_i32, %arg1 : i32, i32
  }
  func.func @transform_2(%arg0: i32, %arg1: i32) -> (i32, i32) {
    %c0_i32 = arith.constant 0 : i32
    %c0_i32_0 = arith.constant 0 : i32
    return %c0_i32, %arg1 : i32, i32
  }
  func.func @transform_3(%arg0: i32, %arg1: i32) -> (i32, i32, i32) {
    %c0_i32 = arith.constant 0 : i32
    %c0_i32_0 = arith.constant 0 : i32
    return %arg0, %c0_i32, %arg1 : i32, i32, i32
  }
}

</mosaic_0001>

<bundles_post_ra>
// kernel: tpu_custom_call.1
= control target key start
LH: loop header
LB: loop body
LE: loop exit
PB: predicated region body
PF: predicated region fallthrough
CT: control target
= control target key end

     0   :  { %8 = vsyncpa [#allocation5], 0  ;;  %s3495_s0 = inlined_call_operand.vmem [shape: bf16[4,2,9,9,128], index: 0, kind: input, shape index: {}]   ;;  %s3496_s1 = inlined_call_operand.vmem [shape: bf16[1152,128], index: 1, kind: input, shape index: {}]   ;;  %s3497_s2 = inlined_call_operand.vmem [shape: f32[1,128], index: 2, kind: input, shape index: {}]   ;;  %s3498_s3 = inlined_call_operand.hbm [shape: f32[2,64,128], index: 3, kind: output, shape index: {}]  }
   0x1   :  { %10 = vsyncpa [#allocation5 + $0x1], 0  ;;  %s2948_s12 = smov 0   ;;  %s2950_s13 = smov 0  }
   0x2   :  { %s2952_s14 = smov 0   ;;  %s2954_s15 = smov 0  }
   0x3   :  { %s2956_s16 = smov 0   ;;  %s2958_s17 = smov 0  }
   0x4 LB: > { %s2281_s18 = sadd.s32 4294967295, %s2923_s17   ;;  %s2282_s19 = sadd.s32 4294967294, %s2923_s17   ;;  %s2923_s17 = sphi %s2958_s17, %s16_s17   ;;  %s2919_s16 = sphi %s2956_s16, %s3507_s16   ;;  %s2915_s15 = sphi %s2954_s15, %s3506_s15   ;;  %s2911_s14 = sphi %s2952_s14, %s3505_s14   ;;  %s2907_s13 = sphi %s2950_s13, %s3504_s13   ;;  %s2903_s12 = sphi %s2948_s12, %s3503_s12  }
   0x5   : > { %s28_s20 = sadd.s32 1, %s2919_s16  ;;  %s35_s21 = sadd.s32 1, %s2911_s14 }
   0x6   : > { %p30_p0 = scmp.ge.s32.totalorder %s28_s20, 2  ;;  %p42_p1 = scmp.ne.s32.totalorder %s2911_s14, %s2907_s13 }
   0x7   : > { %p43_p2 = scmp.eq.s32.totalorder %s2923_s17, 0  ;;  %p126_p3 = scmp.eq.s32.totalorder %s2281_s18, 1 }
   0x8   : > { %s3509_s20 = smov (%p30_p0, %s28_s20), 0  ;;  %p131_p6 = scmp.ne.s32.totalorder %s2907_s13, %s2903_s12 }
   0x9   : > { %p44_p4 = por %p43_p2, %p42_p1  ;;  %p2987_p5 = por %p126_p3, %p42_p1 }
   0xa   : > { %s32_s23 = ssub.s32 %s2919_s16, %s3509_s20  ;;  %p132_p8 = scmp.eq.s32.totalorder %s2282_s19, 1 }
   0xb   : > { %p33_p7 = scmp.eq.s32.totalorder %s32_s23, 0  ;;  %p2286_p10 = scmp.ge.s32.totalorder %s2923_s17, 2 }
   0xc   : > { %p2998_p9 = por %p132_p8, %p131_p6 }
   0xd   : > { %s2996_s24 = scalar_select %p33_p7, %s2911_s14, %s35_s21  }
   0xe   : > { %161 = sbr.rel (%p2286_p10) target bundleno = 44 (0x2c), region = 24 }
  0x15   : > { %164 = sbr.rel (!%p44_p4) target bundleno = 44 (0x2c), region = 28  ;;  %s166_s26 = sand.u32 (%p44_p4), 1, %s2911_s14  }
  0x16   : > { %s2690_s27 = smul.u32 (%p44_p4), 72, %s2919_s16 }
  0x17   : > { %s2689_s28 = smul.u32 (%p44_p4), 288, %s166_s26 }
  0x18   : > { %s3010_s4 = scalar_lea.vmem (%p44_p4), %s3495_s0, %s2690_s27 }
  0x19   : > { %v187_v0 = vld [vmem:[%s3010_s4] sm:$0xff] (%p44_p4)   ;;  %v191_v1 = vld [vmem:[%s3010_s4 + $0x8] sm:$0xff] (%p44_p4)   ;;  %v195_v2 = vld [vmem:[%s3010_s4 + $0x10] sm:$0xff] (%p44_p4)   ;;  %s3015_s5 = scalar_lea.vmem (%p44_p4), [#allocation3], %s2689_s28 }
  0x1a   : > { %188 = vst [vmem:[%s3015_s5] sm:$0xff] (%p44_p4), %v187_v0   ;;  %192 = vst [vmem:[%s3015_s5 + $0x8] sm:$0xff] (%p44_p4), %v191_v1   ;;  %v199_v3 = vld [vmem:[%s3010_s4 + $0x18] sm:$0xff] (%p44_p4)   ;;  %v203_v4 = vld [vmem:[%s3010_s4 + $0x20] sm:$0xff] (%p44_p4)  }
  0x1b   : > { %196 = vst [vmem:[%s3015_s5 + $0x10] sm:$0xff] (%p44_p4), %v195_v2   ;;  %v207_v5 = vld [vmem:[%s3010_s4 + $0x28] sm:$0xff] (%p44_p4)   ;;  %200 = vst [vmem:[%s3015_s5 + $0x18] sm:$0xff] (%p44_p4), %v199_v3   ;;  %v211_v6 = vld [vmem:[%s3010_s4 + $0x30] sm:$0xff] (%p44_p4)  }
  0x1c   : > { %204 = vst [vmem:[%s3015_s5 + $0x20] sm:$0xff] %v203_v4   ;;  %208 = vst [vmem:[%s3015_s5 + $0x28] sm:$0xff] %v207_v5   ;;  %v215_v7 = vld [vmem:[%s3010_s4 + $0x38] sm:$0xff]   ;;  %v219_v8 = vld [vmem:[%s3010_s4 + $0x40] sm:$0xff]  }
  0x1d   : > { %212 = vst [vmem:[%s3015_s5 + $0x30] sm:$0xff] %v211_v6   ;;  %216 = vst [vmem:[%s3015_s5 + $0x38] sm:$0xff] %v215_v7   ;;  %v223_v9 = vld [vmem:[%s3010_s4 + $0x90] sm:$0xff]   ;;  %v227_v10 = vld [vmem:[%s3010_s4 + $0x98] sm:$0xff]  }
  0x1e   : > { %220 = vst [vmem:[%s3015_s5 + $0x40] sm:$0xff] %v219_v8   ;;  %v231_v11 = vld [vmem:[%s3010_s4 + $0xa0] sm:$0xff]   ;;  %224 = vst [vmem:[%s3015_s5 + $0x48] sm:$0xff] %v223_v9   ;;  %v235_v12 = vld [vmem:[%s3010_s4 + $0xa8] sm:$0xff]  }
  0x1f   : > { %228 = vst [vmem:[%s3015_s5 + $0x50] sm:$0xff] %v227_v10   ;;  %232 = vst [vmem:[%s3015_s5 + $0x58] sm:$0xff] %v231_v11   ;;  %v239_v13 = vld [vmem:[%s3010_s4 + $0xb0] sm:$0xff]   ;;  %v243_v14 = vld [vmem:[%s3010_s4 + $0xb8] sm:$0xff]  }
  0x20   : > { %236 = vst [vmem:[%s3015_s5 + $0x60] sm:$0xff] %v235_v12   ;;  %240 = vst [vmem:[%s3015_s5 + $0x68] sm:$0xff] %v239_v13   ;;  %v247_v15 = vld [vmem:[%s3010_s4 + $0xc0] sm:$0xff]   ;;  %v251_v16 = vld [vmem:[%s3010_s4 + $0xc8] sm:$0xff]  }
  0x21   : > { %244 = vst [vmem:[%s3015_s5 + $0x70] sm:$0xff] %v243_v14   ;;  %v255_v17 = vld [vmem:[%s3010_s4 + $0xd0] sm:$0xff]   ;;  %248 = vst [vmem:[%s3015_s5 + $0x78] sm:$0xff] %v247_v15   ;;  %v259_v18 = vld [vmem:[%s3010_s4 + $0x120] sm:$0xff]  }
  0x22   : > { %252 = vst [vmem:[%s3015_s5 + $0x80] sm:$0xff] %v251_v16   ;;  %256 = vst [vmem:[%s3015_s5 + $0x88] sm:$0xff] %v255_v17   ;;  %v263_v19 = vld [vmem:[%s3010_s4 + $0x128] sm:$0xff]   ;;  %v267_v20 = vld [vmem:[%s3010_s4 + $0x130] sm:$0xff]  }
  0x23   : > { %260 = vst [vmem:[%s3015_s5 + $0x90] sm:$0xff] %v259_v18   ;;  %264 = vst [vmem:[%s3015_s5 + $0x98] sm:$0xff] %v263_v19   ;;  %v271_v21 = vld [vmem:[%s3010_s4 + $0x138] sm:$0xff]   ;;  %v275_v22 = vld [vmem:[%s3010_s4 + $0x140] sm:$0xff]  }
  0x24   : > { %268 = vst [vmem:[%s3015_s5 + $0xa0] sm:$0xff] %v267_v20   ;;  %v279_v23 = vld [vmem:[%s3010_s4 + $0x148] sm:$0xff]   ;;  %272 = vst [vmem:[%s3015_s5 + $0xa8] sm:$0xff] %v271_v21   ;;  %v283_v24 = vld [vmem:[%s3010_s4 + $0x150] sm:$0xff]  }
  0x25   : > { %276 = vst [vmem:[%s3015_s5 + $0xb0] sm:$0xff] %v275_v22   ;;  %280 = vst [vmem:[%s3015_s5 + $0xb8] sm:$0xff] %v279_v23   ;;  %v287_v25 = vld [vmem:[%s3010_s4 + $0x158] sm:$0xff]   ;;  %v291_v26 = vld [vmem:[%s3010_s4 + $0x160] sm:$0xff]  }
  0x26   : > { %284 = vst [vmem:[%s3015_s5 + $0xc0] sm:$0xff] %v283_v24   ;;  %288 = vst [vmem:[%s3015_s5 + $0xc8] sm:$0xff] %v287_v25   ;;  %v295_v27 = vld [vmem:[%s3010_s4 + $0x1b0] sm:$0xff]   ;;  %v299_v28 = vld [vmem:[%s3010_s4 + $0x1b8] sm:$0xff]  }
  0x27   : > { %292 = vst [vmem:[%s3015_s5 + $0xd0] sm:$0xff] %v291_v26   ;;  %v303_v29 = vld [vmem:[%s3010_s4 + $0x1c0] sm:$0xff]   ;;  %296 = vst [vmem:[%s3015_s5 + $0xd8] sm:$0xff] %v295_v27   ;;  %v307_v30 = vld [vmem:[%s3010_s4 + $0x1c8] sm:$0xff]  }
  0x28   : > { %300 = vst [vmem:[%s3015_s5 + $0xe0] sm:$0xff] %v299_v28   ;;  %304 = vst [vmem:[%s3015_s5 + $0xe8] sm:$0xff] %v303_v29   ;;  %v311_v31 = vld [vmem:[%s3010_s4 + $0x1d0] sm:$0xff]   ;;  %v315_v32 = vld [vmem:[%s3010_s4 + $0x1d8] sm:$0xff]  }
  0x29   : > { %308 = vst [vmem:[%s3015_s5 + $0xf0] sm:$0xff] %v307_v30   ;;  %312 = vst [vmem:[%s3015_s5 + $0xf8] sm:$0xff] %v311_v31   ;;  %v319_v33 = vld [vmem:[%s3010_s4 + $0x1e0] sm:$0xff]   ;;  %v323_v34 = vld [vmem:[%s3010_s4 + $0x1e8] sm:$0xff]  }
  0x2a   : > { %316 = vst [vmem:[%s3015_s5 + $0x100] sm:$0xff] %v315_v32   ;;  %v327_v35 = vld [vmem:[%s3010_s4 + $0x1f0] sm:$0xff]   ;;  %320 = vst [vmem:[%s3015_s5 + $0x108] sm:$0xff] %v319_v33  }
  0x2b   : > { %324 = vst [vmem:[%s3015_s5 + $0x110] sm:$0xff] %v323_v34   ;;  %328 = vst [vmem:[%s3015_s5 + $0x118] sm:$0xff] %v327_v35  }
  0x2c PF: > { %p2288_p11 = scmp.ge.s32.totalorder %s2923_s17, 1  ;;  %p496_p12 = scmp.lt.s32.totalorder %s2923_s17, 3 }
  0x2e   : > { %p497_p13 = pnand %p2288_p11, %p496_p12 }
  0x2f   : > { %v2749_v36 = vld [vmem:[%s3496_s1 + $0x40] sm:$0xff] (!%p497_p13)   ;;  %v2753_v40 = vld [vmem:[%s3496_s1 + $0x48] sm:$0xff] (!%p497_p13)   ;;  %v2757_v44 = vld [vmem:[%s3496_s1 + $0x50] sm:$0xff] (!%p497_p13)   ;;  %s3164_s5 = sand.u32 (!%p497_p13), 1, %s2907_s13   ;;  %vm630_vm0 = vsmask.f32 (!%p497_p13), 3328 }
  0x30   : > { %500 = sbr.rel (%p497_p13) target bundleno = 383 (0x17f), region = 69  ;;  %v2750_v37 = vld [vmem:[%s3496_s1 + $0xc0] sm:$0xff] (!%p497_p13)   ;;  %2477 = vmatprep.subr.bf16.mxu0 (!%p497_p13), %v2749_v36  ;;  %v2754_v41 = vld [vmem:[%s3496_s1 + $0xc8] sm:$0xff] (!%p497_p13)   ;;  %v2758_v45 = vld [vmem:[%s3496_s1 + $0xd0] sm:$0xff] (!%p497_p13)   ;;  %vm631_vm1 = vsmask.f32 (!%p497_p13), 7440 }
  0x31   : > { %v2751_v38 = vld [vmem:[%s3496_s1] sm:$0xff] (!%p497_p13)   ;;  %2517 = vmatprep.subr.bf16.mxu1 (!%p497_p13), %v2750_v37  ;;  %v2755_v42 = vld [vmem:[%s3496_s1 + $0x8] sm:$0xff] (!%p497_p13)   ;;  %v2759_v46 = vld [vmem:[%s3496_s1 + $0x10] sm:$0xff] (!%p497_p13)   ;;  %s2691_s18 = smul.u32 (!%p497_p13), 288, %s3164_s5  ;;  %s2476_s21 = sshll.u32 (!%p497_p13), %s2915_s15, 10 }
  0x32   : > { %v2752_v39 = vld [vmem:[%s3496_s1 + $0x80] sm:$0xff] (!%p497_p13)   ;;  %2478 = vmatpush3.bf16.msra.mxu0 (!%p497_p13), %v2751_v38  ;;  %v2756_v43 = vld [vmem:[%s3496_s1 + $0x88] sm:$0xff] (!%p497_p13)   ;;  %v2760_v47 = vld [vmem:[%s3496_s1 + $0x90] sm:$0xff] (!%p497_p13)   ;;  %s3444_s28 = scalar_lea.hbm (!%p497_p13), %s3498_s3, %s2476_s21  ;;  %s2162_s15 = scalar_lea.sflag (!%p497_p13), [#allocation5], %s3164_s5 }
  0x33   : > { %2518 = vmatpush3.bf16.msra.mxu1 (!%p497_p13), %v2752_v39  ;;  %2479 = vmatprep.subr.bf16.mxu0 (!%p497_p13), %v2753_v40  ;;  %v2761_v48 = vld [vmem:[%s3496_s1 + $0x58] sm:$0xff] (!%p497_p13)   ;;  %v2765_v52 = vld [vmem:[%s3496_s1 + $0x60] sm:$0xff] (!%p497_p13)   ;;  %v2769_v56 = vld [vmem:[%s3496_s1 + $0x68] sm:$0xff] (!%p497_p13)   ;;  %s3188_s4 = scalar_lea.vmem (!%p497_p13), [#allocation3], %s2691_s18  ;;  %s2289_s18 = sshll.u32 (!%p497_p13), %s3164_s5, 6 }
  0x34   : > { %2519 = vmatprep.subr.bf16.mxu1 (!%p497_p13), %v2754_v41  ;;  %v2762_v49 = vld [vmem:[%s3496_s1 + $0xd8] sm:$0xff] (!%p497_p13)   ;;  %v2766_v53 = vld [vmem:[%s3496_s1 + $0xe0] sm:$0xff] (!%p497_p13)   ;;  %v2770_v57 = vld [vmem:[%s3496_s1 + $0xe8] sm:$0xff] (!%p497_p13)   ;;  %s532_s19 = scalar_lea.vmem (!%p497_p13), [#allocation4], %s2289_s18  ;;  %s2925_s30 = smov (!%p497_p13), [#allocation4]  }
  0x35   : > { %v2763_v50 = vld [vmem:[%s3496_s1 + $0x18] sm:$0xff] (!%p497_p13)   ;;  %v2767_v54 = vld [vmem:[%s3496_s1 + $0x20] sm:$0xff] (!%p497_p13)   ;;  %v2771_v58 = vld [vmem:[%s3496_s1 + $0x28] sm:$0xff] (!%p497_p13)   ;;  %s2176_s23 = sshll.u32 (!%p497_p13), %s532_s19, 4  ;;  %s2849_s6 = sshll.u32 (!%p497_p13), %s2925_s30, 4  ;;  %s3446_s23 = int_to_ptr.vmem [resolvable:$true] %s2176_s23  ;;  %s2850_s6 = int_to_ptr.vmem [resolvable:$false] %s2849_s6 }
  0x36   : > { %2480 = vmatpush3.bf16.msra.mxu0 (!%p497_p13), %v2755_v42  ;;  %v2764_v51 = vld [vmem:[%s3496_s1 + $0x98] sm:$0xff] (!%p497_p13)   ;;  %v2768_v55 = vld [vmem:[%s3496_s1 + $0xa0] sm:$0xff] (!%p497_p13)   ;;  %v2772_v59 = vld [vmem:[%s3496_s1 + $0xa8] sm:$0xff] (!%p497_p13)   ;;  %s2845_s29 = scalar_lea.vmem (!%p497_p13), %s3446_s23, 1024  ;;  %s2851_s7 = scalar_lea.vmem (!%p497_p13), %s2850_s6, 2048 }
  0x37   : > { %2520 = vmatpush3.bf16.msra.mxu1 %v2756_v43  ;;  %2481 = vmatprep.subr.bf16.mxu0 %v2757_v44  ;;  %v2773_v60 = vld [vmem:[%s3496_s1 + $0x70] sm:$0xff]   ;;  %v2777_v0 = vld [vmem:[%s3496_s1 + $0x78] sm:$0xff]   ;;  %v2783_v6 = vld [vmem:[%s3188_s4] ss:$8 sps:$4 sm:$0xff]   ;;  %p2846_p0 = scmp.ne.s32.totalorder %s3446_s23, %s2845_s29  ;;  %p2852_p3 = scmp.lt.s32.totalorder %s3446_s23, %s2850_s6 }
  0x38   : > { %2521 = vmatprep.subr.bf16.mxu1 %v2758_v45  ;;  %v2774_v61 = vld [vmem:[%s3496_s1 + $0xf0] sm:$0xff]   ;;  %v2778_v1 = vld [vmem:[%s3496_s1 + $0xf8] sm:$0xff]   ;;  %v614_v7 = vld [vmem:[%s3188_s4] sm:$0xf]  ;;  %p2853_p4 = scmp.lt.s32.totalorder %s2851_s7, %s2845_s29 }
  0x39   : > { %v2775_v62 = vld [vmem:[%s3496_s1 + $0x30] sm:$0xff]   ;;  %v2779_v2 = vld [vmem:[%s3496_s1 + $0x38] sm:$0xff]   ;;  %v615_v8 = vld [vmem:[%s3188_s4 + $0x4] sm:$0x1]  ;;  %v634_v11 = vshrl.u32 %v614_v7, 16  ;;  %v637_v12 = vshll.u32 %v614_v7, 16  ;;  %p2847_p1 = pnand %p2846_p0, %p2987_p5 }
  0x3a   : > { %2482 = vmatpush3.bf16.msra.mxu0 %v2759_v46  ;;  %v2776_v63 = vld [vmem:[%s3496_s1 + $0xb0] sm:$0xff]   ;;  %v2780_v3 = vld [vmem:[%s3496_s1 + $0xb8] sm:$0xff]   ;;  %v616_v9 = vld [vmem:[%s3188_s4 + $0x8] sm:$0xf]  ;;  %v643_v13 = vshll.u32 %v615_v8, 16  ;;  %p2854_p6 = por %p2853_p4, %p2852_p3 }
  0x3b   : > { %2522 = vmatpush3.bf16.msra.mxu1 %v2760_v47  ;;  %2483 = vmatprep.subr.bf16.mxu0 %v2761_v48  ;;  %v2781_v4 = vld [vmem:[%s3188_s4 + $0x48] ss:$8 sps:$4 sm:$0xff]   ;;  %v617_v10 = vld [vmem:[%s3188_s4 + $0xc] sm:$0x1]  ;;  %v648_v14 = vshrl.u32 %v616_v9, 16  ;;  %v651_v15 = vshll.u32 %v616_v9, 16  ;;  %vm3208_vm2 = vmor %vm630_vm0, %vm631_vm1  ;;  %p2848_p2 = pneg %p2847_p1 }
  0x3c   : > { %2523 = vmatprep.subr.bf16.mxu1 %v2762_v49  ;;  %v2782_v5 = vld [vmem:[%s3188_s4 + $0x90] ss:$8 sps:$4 sm:$0xff]   ;;  %1860 = vmatprep.mubr.bf16.mxu0 %v2781_v4  ;;  %v657_v16 = vshll.u32 %v617_v10, 16  ;;  %v2784_v17 = vld [vmem:[%s3496_s1 + $0x140] sm:$0xff]   ;;  %v636_v19 = vrot.slane %v634_v11, 4  ;;  %v639_v20 = vrot.slane %v637_v12, 5 }
  0x3d   : > { %1925 = vmatprep.mubr.bf16.mxu1 %v2782_v5  ;;  %v2785_v18 = vld [vmem:[%s3496_s1 + $0x1c0] sm:$0xff]   ;;  %v650_v21 = vrot.slane %v648_v14, 4  ;;  %v653_v22 = vrot.slane %v651_v15, 5  ;;  %v645_v24 = vrot.slane %v643_v13, 5  ;;  %v2788_v30 = vld [vmem:[%s3496_s1 + $0x148] sm:$0xff]   ;;  %v2801_v5 = vld [vmem:[%s3496_s1 + $0x118] sm:$0xff]   ;;  %p2855_p7 = pnand %p2854_p6, %p2848_p2 }
  0x3e   : > { %2484 = vmatpush3.bf16.msra.mxu0 %v2763_v50  ;;  %v640_v23 = vor.u32 %v639_v20, %v636_v19  ;;  %v2786_v25 = vld [vmem:[%s3496_s1 + $0x100] sm:$0xff]   ;;  %v659_v28 = vrot.slane %v657_v16, 5  ;;  %v2790_v34 = vld [vmem:[%s3496_s1 + $0x108] sm:$0xff]   ;;  %v2794_v41 = vld [vmem:[%s3188_s4 + $0x10] ss:$8 sps:$4 sm:$0xff]  }
  0x3f   : > { %2524 = vmatpush3.bf16.msra.mxu1 %v2764_v51  ;;  %2485 = vmatprep.subr.bf16.mxu0 %v2765_v52  ;;  %v654_v27 = vor.u32 %v653_v22, %v650_v21  ;;  %v2787_v32 = vld [vmem:[%s3496_s1 + $0x180] sm:$0xff]   ;;  %v2789_v36 = vld [vmem:[%s3496_s1 + $0x1c8] sm:$0xff]   ;;  %v618_v42 = vld [vmem:[%s3188_s4 + $0x10] sm:$0xf] }
  0x40   : > { %2525 = vmatprep.subr.bf16.mxu1 %v2766_v53  ;;  %v641_v29 = vrot.slane %v640_v23, 4  ;;  %v2792_v38 = vld [vmem:[%s3188_s4 + $0x58] ss:$8 sps:$4 sm:$0xff]   ;;  %v2791_v39 = vld [vmem:[%s3496_s1 + $0x188] sm:$0xff]   ;;  %v619_v43 = vld [vmem:[%s3188_s4 + $0x14] sm:$0x1] }
  0x41   : > { %v655_v31 = vrot.slane %v654_v27, 4  ;;  %v2793_v40 = vld [vmem:[%s3188_s4 + $0xa0] ss:$8 sps:$4 sm:$0xff]   ;;  %v620_v44 = vld [vmem:[%s3188_s4 + $0x18] sm:$0xf]  ;;  %v662_v46 = vshrl.u32 %v618_v42, 16 }
  0x42   : > { %2486 = vmatpush3.bf16.msra.mxu0 %v2767_v54  ;;  %v646_v33 = vsel %vm3208_vm2, %v641_v29, %v645_v24  ;;  %v621_v45 = vld [vmem:[%s3188_s4 + $0x1c] sm:$0x1]  ;;  %v665_v47 = vshll.u32 %v618_v42, 16  ;;  %v671_v48 = vshll.u32 %v619_v43, 16  ;;  %v676_v49 = vshrl.u32 %v620_v44, 16  ;;  %v2795_v52 = vld [vmem:[%s3496_s1 + $0x150] sm:$0xff]  }
  0x43   : > { %2526 = vmatpush3.bf16.msra.mxu1 %v2768_v55  ;;  %2487 = vmatprep.subr.bf16.mxu0 %v2769_v56  ;;  %v660_v35 = vsel %vm3208_vm2, %v655_v31, %v659_v28  ;;  %v679_v50 = vshll.u32 %v620_v44, 16  ;;  %v685_v51 = vshll.u32 %v621_v45, 16  ;;  %v2796_v53 = vld [vmem:[%s3496_s1 + $0x1d0] sm:$0xff]   ;;  %v664_v54 = vrot.slane %v662_v46, 4  ;;  %v2802_v7 = vld [vmem:[%s3496_s1 + $0x198] sm:$0xff]   ;;  %v2806_v22 = vld [vmem:[%s3496_s1 + $0x160] sm:$0xff]  }
  0x44   : > { %2527 = vmatprep.subr.bf16.mxu1 %v2770_v57  ;;  %v2306_v37 = vcombine.low %v646_v33, %v660_v35  ;;  %v667_v55 = vrot.slane %v665_v47, 5  ;;  %v678_v56 = vrot.slane %v676_v49, 4  ;;  %v2803_v9 = vld [vmem:[%s3188_s4 + $0x68] ss:$8 sps:$4 sm:$0xff]   ;;  %v622_v12 = vld [vmem:[%s3188_s4 + $0x20] sm:$0xf] }
  0x45   : > { %v681_v57 = vrot.slane %v679_v50, 5  ;;  %v2804_v10 = vld [vmem:[%s3188_s4 + $0xb0] ss:$8 sps:$4 sm:$0xff]   ;;  %v2805_v11 = vld [vmem:[%s3188_s4 + $0x20] ss:$8 sps:$4 sm:$0xff]   ;;  %v690_v16 = vshrl.u32 %v622_v12, 16 }
  0x46   : > { %2488 = vmatpush3.bf16.msra.mxu0 %v2771_v58  ;;  %v668_v58 = vor.u32 %v667_v55, %v664_v54  ;;  %v623_v13 = vld [vmem:[%s3188_s4 + $0x24] sm:$0x1]  ;;  %v624_v14 = vld [vmem:[%s3188_s4 + $0x28] sm:$0xf]  ;;  %v625_v15 = vld [vmem:[%s3188_s4 + $0x2c] sm:$0x1] }
  0x47   : > { %2528 = vmatpush3.bf16.msra.mxu1 %v2772_v59  ;;  %2489 = vmatprep.subr.bf16.mxu0 %v2773_v60  ;;  %v673_v59 = vrot.slane %v671_v48, 5  ;;  %v2797_v60 = vld [vmem:[%s3496_s1 + $0x110] sm:$0xff]   ;;  %v704_v19 = vshrl.u32 %v624_v14, 16  ;;  %v707_v20 = vshll.u32 %v624_v14, 16  ;;  %v713_v21 = vshll.u32 %v625_v15, 16  ;;  %v2807_v23 = vld [vmem:[%s3496_s1 + $0x1e0] sm:$0xff]  }
  0x48   : > { %2529 = vmatprep.subr.bf16.mxu1 %v2774_v61  ;;  %v682_v61 = vor.u32 %v681_v57, %v678_v56  ;;  %v692_v24 = vrot.slane %v690_v16, 4  ;;  %v2808_v31 = vld [vmem:[%s3496_s1 + $0x120] sm:$0xff]   ;;  %v2813_v42 = vld [vmem:[%s3496_s1 + $0x1a8] sm:$0xff]   ;;  %v2816_v46 = vld [vmem:[%s3188_s4 + $0x30] ss:$8 sps:$4 sm:$0xff]  }
  0x49   : > { %v706_v27 = vrot.slane %v704_v19, 4  ;;  %v709_v28 = vrot.slane %v707_v20, 5  ;;  %v715_v33 = vrot.slane %v713_v21, 5  ;;  %v2814_v44 = vld [vmem:[%s3188_s4 + $0x78] ss:$8 sps:$4 sm:$0xff]   ;;  %v2817_v57 = vld [vmem:[%s3496_s1 + $0x170] sm:$0xff]  }
  0x4a   : > { %2490 = vmatpush3.bf16.msra.mxu0 %v2775_v62  ;;  %v687_v62 = vrot.slane %v685_v51, 5  ;;  %v2815_v45 = vld [vmem:[%s3188_s4 + $0xc0] ss:$8 sps:$4 sm:$0xff]   ;;  %v626_v47 = vld [vmem:[%s3188_s4 + $0x30] sm:$0xf] }
  0x4b   : > { %2530 = vmatpush3.bf16.msra.mxu1 %v2776_v63  ;;  %2491 = vmatprep.subr.bf16.mxu0 %v2777_v0  ;;  %v2798_v63 = vld [vmem:[%s3496_s1 + $0x190] sm:$0xff]   ;;  %v669_v0 = vrot.slane %v668_v58, 4  ;;  %v628_v49 = vld [vmem:[%s3188_s4 + $0x38] sm:$0xf]  ;;  %v629_v50 = vld [vmem:[%s3188_s4 + $0x3c] sm:$0x1] }
  0x4c   : > { %2531 = vmatprep.subr.bf16.mxu1 %v2778_v1  ;;  %v2799_v1 = vld [vmem:[%s3496_s1 + $0x158] sm:$0xff]   ;;  %v627_v48 = vld [vmem:[%s3188_s4 + $0x34] sm:$0x1]  ;;  %v718_v51 = vshrl.u32 %v626_v47, 16  ;;  %v732_v54 = vshrl.u32 %v628_v49, 16  ;;  %v735_v55 = vshll.u32 %v628_v49, 16 }
  0x4d   : > { %v674_v4 = vsel %vm3208_vm2, %v669_v0, %v673_v59  ;;  %v741_v56 = vshll.u32 %v629_v50, 16  ;;  %v2818_v58 = vld [vmem:[%s3496_s1 + $0x1f0] sm:$0xff]   ;;  %v2336_v16 = vld [vmem:[%s3188_s4 + $0x98] sm:$0xf] }
  0x4e   : > { %2492 = vmatpush3.bf16.msra.mxu0 %v2779_v2  ;;  %v683_v2 = vrot.slane %v682_v61, 4  ;;  %v720_v59 = vrot.slane %v718_v51, 4  ;;  %v734_v61 = vrot.slane %v732_v54, 4  ;;  %v2335_v15 = vld [vmem:[%s3188_s4 + $0x94] sm:$0x1]  ;;  %v870_v21 = vshrl.u32 %v2336_v16, 16 }
  0x4f   : > { %2532 = vmatpush3.bf16.msra.mxu1 %v2780_v3  ;;  %2557 = vmatprep.subr.bf16.mxu0 %v2784_v17  ;;  %v2800_v3 = vld [vmem:[%s3496_s1 + $0x1d8] sm:$0xff]   ;;  %v693_v17 = vshll.u32 %v622_v12, 16  ;;  %v865_v20 = vshll.u32 %v2335_v15, 16 }
  0x50   : > { %2597 = vmatprep.subr.bf16.mxu1 %v2785_v18  ;;  %v699_v18 = vshll.u32 %v623_v13, 16  ;;  %v2824_v12 = vld [vmem:[%s3496_s1 + $0x1b8] sm:$0xff]   ;;  %v2334_v13 = vld [vmem:[%s3188_s4 + $0x90] sm:$0xf] }
  0x51   : > { %1861 = vmatmul.mubr.bf16.vlgmr.msra.gmra.mrb[0].mxu0 %v2783_v6  ;;  %v688_v6 = vsel %vm3208_vm2, %v683_v2, %v687_v62  ;;  %v737_v62 = vrot.slane %v735_v55, 5  ;;  %v859_v19 = vshll.u32 %v2334_v13, 16 }
  0x52   : > { %2558 = vmatpush3.bf16.msra.mxu0 %v2786_v25  ;;  %1926 = vmatmul.mubr.bf16.vlgmr.msra.gmra.mrb[0].mxu1 %v2306_v37  ;;  %v2307_v8 = vcombine.low %v674_v4, %v688_v6  ;;  %v695_v25 = vrot.slane %v693_v17, 5  ;;  %v2820_v4 = vld [vmem:[%s3496_s1 + $0x1b0] sm:$0xff]   ;;  %v2821_v6 = vld [vmem:[%s3496_s1 + $0x178] sm:$0xff]  }
  0x53   : > { %2559 = vmatprep.subr.bf16.mxu0 %v2788_v30  ;;  %1868 = vmatprep.mubr.bf16.mxu0 %v2792_v38  ;;  %v701_v30 = vrot.slane %v699_v18, 5  ;;  %v2811_v38 = vld [vmem:[%s3496_s1 + $0x1e8] sm:$0xff]   ;;  %v738_v2 = vor.u32 %v737_v62, %v734_v61  ;;  %v2337_v17 = vld [vmem:[%s3188_s4 + $0x9c] sm:$0x1]  ;;  %v856_v18 = vshrl.u32 %v2334_v13, 16 }
  0x54   : > { %2598 = vmatpush3.bf16.msra.mxu1 %v2787_v32  ;;  %1933 = vmatprep.mubr.bf16.mxu1 %v2793_v40  ;;  %v696_v29 = vor.u32 %v695_v25, %v692_v24  ;;  %v710_v32 = vor.u32 %v709_v28, %v706_v27  ;;  %v2812_v40 = vld [vmem:[%s3496_s1 + $0x128] sm:$0xff]   ;;  %v2825_v24 = vld [vmem:[%s3188_s4 + $0x50] ss:$8 sps:$4 sm:$0xff]   ;;  %v861_v27 = vrot.slane %v859_v19, 5  ;;  %v872_v28 = vrot.slane %v870_v21, 4 }
  0x55   : > { %2599 = vmatprep.subr.bf16.mxu1 %v2789_v36  ;;  %v2810_v36 = vld [vmem:[%s3496_s1 + $0x168] sm:$0xff]   ;;  %v858_v25 = vrot.slane %v856_v18, 4  ;;  %v2835_v21 = vld [vmem:[%s3188_s4 + $0x70] ss:$8 sps:$4 sm:$0xff]  }
  0x56   : > { %2560 = vmatpush3.bf16.msra.mxu0 %v2790_v34  ;;  %v2809_v34 = vld [vmem:[%s3496_s1 + $0x1a0] sm:$0xff]   ;;  %v697_v35 = vrot.slane %v696_v29, 4  ;;  %v711_v37 = vrot.slane %v710_v32, 4  ;;  %v867_v29 = vrot.slane %v865_v20, 5  ;;  %v2827_v32 = vld [vmem:[%s3188_s4 + $0x8] ss:$8 sps:$4 sm:$0xff]  }
  0x57   : > { %2561 = vmatprep.subr.bf16.mxu0 %v2795_v52  ;;  %v721_v52 = vshll.u32 %v626_v47, 16 }
  0x58   : > { %2600 = vmatpush3.bf16.msra.mxu1 %v2791_v39  ;;  %v702_v39 = vsel %vm3208_vm2, %v697_v35, %v701_v30  ;;  %v2828_v35 = vld [vmem:[%s3496_s1 + $0x200] sm:$0xff]  }
  0x59   : > { %1869 = vmatmul.mubr.bf16.gmra.mrb[4].mxu0 %v2794_v41  ;;  %2601 = vmatprep.subr.bf16.mxu1 %v2796_v53  ;;  %v716_v41 = vsel %vm3208_vm2, %v711_v37, %v715_v33  ;;  %v727_v53 = vshll.u32 %v627_v48, 16 }
  0x5a   : > { %2562 = vmatpush3.bf16.msra.mxu0 %v2797_v60  ;;  %1934 = vmatmul.mubr.bf16.gmra.mrb[4].mxu1 %v2307_v8  ;;  %v2308_v43 = vcombine.low %v702_v39, %v716_v41  ;;  %v723_v60 = vrot.slane %v721_v52, 5  ;;  %v2822_v8 = vld [vmem:[%s3496_s1 + $0x1f8] sm:$0xff]   ;;  %v2829_v39 = vld [vmem:[%s3496_s1 + $0x208] sm:$0xff]   ;;  %v2339_v41 = vld [vmem:[%s3188_s4 + $0xa4] sm:$0x1] }
  0x5b   : > { %2563 = vmatprep.subr.bf16.mxu0 %v2799_v1  ;;  %1876 = vmatprep.mubr.bf16.mxu0 %v2803_v9  ;;  %v729_v0 = vrot.slane %v727_v53, 5  ;;  %v2819_v1 = vld [vmem:[%s3496_s1 + $0x130] sm:$0xff]   ;;  %v893_v48 = vshll.u32 %v2339_v41, 16 }
  0x5c   : > { %2602 = vmatpush3.bf16.msra.mxu1 %v2798_v63  ;;  %1941 = vmatprep.mubr.bf16.mxu1 %v2804_v10  ;;  %v724_v63 = vor.u32 %v723_v60, %v720_v59  ;;  %v2823_v10 = vld [vmem:[%s3496_s1 + $0x138] sm:$0xff]  }
  0x5d   : > { %2603 = vmatprep.subr.bf16.mxu1 %v2800_v3  ;;  %v743_v3 = vrot.slane %v741_v56, 5  ;;  %v895_v60 = vrot.slane %v893_v48, 5  ;;  %v2843_v48 = vld [vmem:[%s3496_s1 + $0x230] sm:$0xff]  }
  0x5e   : > { %2564 = vmatpush3.bf16.msra.mxu0 %v2801_v5  ;;  %v725_v5 = vrot.slane %v724_v63, 4 }
  0x5f   : > { %2565 = vmatprep.subr.bf16.mxu0 %v2806_v22  ;;  %v873_v22 = vshll.u32 %v2336_v16, 16 }
  0x60   : > { %2604 = vmatpush3.bf16.msra.mxu1 %v2802_v7  ;;  %v739_v7 = vrot.slane %v738_v2, 4  ;;  %v730_v9 = vsel %vm3208_vm2, %v725_v5, %v729_v0  ;;  %v2832_v0 = vld [vmem:[%s3188_s4 + $0x18] ss:$8 sps:$4 sm:$0xff]   ;;  %v2831_v2 = vld [vmem:[%s3188_s4 + $0xe8] ss:$8 sps:$4 sm:$0xff]  }
  0x61   : > { %1877 = vmatmul.mubr.bf16.gmra.mrb[8].mxu0 %v2805_v11  ;;  %2605 = vmatprep.subr.bf16.mxu1 %v2807_v23  ;;  %v879_v23 = vshll.u32 %v2337_v17, 16  ;;  %v875_v30 = vrot.slane %v873_v22, 5  ;;  %v2342_v5 = vld [vmem:[%s3188_s4 + $0xb0] sm:$0xf]  ;;  %v2838_v22 = vld [vmem:[%s3496_s1 + $0x220] sm:$0xff]  }
  0x62   : > { %2566 = vmatpush3.bf16.msra.mxu0 %v2808_v31  ;;  %1942 = vmatmul.mubr.bf16.gmra.mrb[8].mxu1 %v2308_v43  ;;  %v744_v11 = vsel %vm3208_vm2, %v739_v7, %v743_v3  ;;  %v862_v31 = vor.u32 %v861_v27, %v858_v25  ;;  %v2340_v43 = vld [vmem:[%s3188_s4 + $0xa8] sm:$0xf]  ;;  %v2834_v3 = vld [vmem:[%s3496_s1 + $0x218] sm:$0xff]  }
  0x63   : > { %2567 = vmatprep.subr.bf16.mxu0 %v2810_v36  ;;  %1884 = vmatprep.mubr.bf16.mxu0 %v2814_v44  ;;  %v2309_v14 = vcombine.low %v730_v9, %v744_v11  ;;  %v876_v33 = vor.u32 %v875_v30, %v872_v28  ;;  %v2341_v44 = vld [vmem:[%s3188_s4 + $0xac] sm:$0x1]  ;;  %v898_v49 = vshrl.u32 %v2340_v43, 16  ;;  %v901_v50 = vshll.u32 %v2340_v43, 16  ;;  %v2345_v9 = vld [vmem:[%s3188_s4 + $0xbc] sm:$0x1] }
  0x64   : > { %2606 = vmatpush3.bf16.msra.mxu1 %v2809_v34  ;;  %1949 = vmatprep.mubr.bf16.mxu1 %v2815_v45  ;;  %v881_v34 = vrot.slane %v879_v23, 5  ;;  %v863_v36 = vrot.slane %v862_v31, 4  ;;  %v907_v54 = vshll.u32 %v2341_v44, 16  ;;  %v915_v11 = vshll.u32 %v2342_v5, 16  ;;  %v2839_v30 = vld [vmem:[%s3496_s1 + $0x228] sm:$0xff]  }
  0x65   : > { %2607 = vmatprep.subr.bf16.mxu1 %v2811_v38  ;;  %v877_v37 = vrot.slane %v876_v33, 4  ;;  %v2826_v38 = vld [vmem:[%s3188_s4 + $0xd8] ss:$8 sps:$4 sm:$0xff]   ;;  %v900_v55 = vrot.slane %v898_v49, 4  ;;  %v903_v56 = vrot.slane %v901_v50, 5  ;;  %v935_v18 = vshll.u32 %v2345_v9, 16 }
  0x66   : > { %2568 = vmatpush3.bf16.msra.mxu0 %v2812_v40  ;;  %v2338_v40 = vld [vmem:[%s3188_s4 + $0xa0] sm:$0xf]  ;;  %v909_v62 = vrot.slane %v907_v54, 5  ;;  %v917_v17 = vrot.slane %v915_v11, 5  ;;  %v2386_v9 = vld [vmem:[%s3188_s4 + $0x28] sm:$0xf] }
  0x67   : > { %2569 = vmatprep.subr.bf16.mxu0 %v2817_v57  ;;  %v884_v45 = vshrl.u32 %v2338_v40, 16  ;;  %v882_v47 = vsel %vm3208_vm2, %v877_v37, %v881_v34  ;;  %v2830_v57 = vld [vmem:[%s3188_s4 + $0x60] ss:$8 sps:$4 sm:$0xff]   ;;  %v904_v61 = vor.u32 %v903_v56, %v900_v55  ;;  %v937_v27 = vrot.slane %v935_v18, 5  ;;  %v2388_v18 = vld [vmem:[%s3188_s4 + $0x30] sm:$0xf] }
  0x68   : > { %2608 = vmatpush3.bf16.msra.mxu1 %v2813_v42  ;;  %v868_v42 = vsel %vm3208_vm2, %v863_v36, %v867_v29  ;;  %v2837_v29 = vld [vmem:[%s3188_s4 + $0x28] ss:$8 sps:$4 sm:$0xff]   ;;  %v2346_v34 = vld [vmem:[%s3188_s4 + $0xc0] sm:$0xf] }
  0x69   : > { %1885 = vmatmul.mubr.bf16.gmra.mrb[12].mxu0 %v2816_v46  ;;  %2609 = vmatprep.subr.bf16.mxu1 %v2818_v58  ;;  %v887_v46 = vshll.u32 %v2338_v40, 16  ;;  %v2350_v51 = vcombine.low %v868_v42, %v882_v47  ;;  %v886_v52 = vrot.slane %v884_v45, 4  ;;  %v2833_v58 = vld [vmem:[%s3496_s1 + $0x210] sm:$0xff]   ;;  %v2348_v37 = vld [vmem:[%s3188_s4 + $0xc8] sm:$0xf]  ;;  %v943_v40 = vshll.u32 %v2346_v34, 16 }
  0x6a   : > { %2570 = vmatpush3.bf16.msra.mxu0 %v2819_v1  ;;  %1950 = vmatmul.mubr.bf16.gmra.mrb[12].mxu1 %v2309_v14  ;;  %v905_v1 = vrot.slane %v904_v61, 4  ;;  %v954_v43 = vshrl.u32 %v2348_v37, 16  ;;  %v957_v44 = vshll.u32 %v2348_v37, 16 }
  0x6b   : > { %2571 = vmatprep.subr.bf16.mxu0 %v2821_v6  ;;  %2055 = vmatprep.mubr.bf16.mxu1 %v2825_v24  ;;  %v889_v53 = vrot.slane %v887_v46, 5  ;;  %v2343_v6 = vld [vmem:[%s3188_s4 + $0xb4] sm:$0x1]  ;;  %v945_v46 = vrot.slane %v943_v40, 5  ;;  %v2384_v40 = vld [vmem:[%s3188_s4 + $0x20] sm:$0xf] }
  0x6c   : > { %2610 = vmatpush3.bf16.msra.mxu1 %v2820_v4  ;;  %1990 = vmatprep.mubr.bf16.mxu0 %v2350_v51  ;;  %v910_v7 = vsel %vm3208_vm2, %v905_v1, %v909_v62  ;;  %v921_v13 = vshll.u32 %v2343_v6, 16  ;;  %v956_v49 = vrot.slane %v954_v43, 4  ;;  %v959_v50 = vrot.slane %v957_v44, 5  ;;  %v2840_v51 = vld [vmem:[%s3188_s4 + $0x80] ss:$8 sps:$4 sm:$0xff]  }
  0x6d   : > { %2611 = vmatprep.subr.bf16.mxu1 %v2822_v8  ;;  %v890_v59 = vor.u32 %v889_v53, %v886_v52  ;;  %v2344_v8 = vld [vmem:[%s3188_s4 + $0xb8] sm:$0xf]  ;;  %v2378_v62 = vld [vmem:[%s3188_s4 + $0x8] sm:$0xf]  ;;  %v2380_v1 = vld [vmem:[%s3188_s4 + $0x10] sm:$0xf] }
  0x6e   : > { %2572 = vmatpush3.bf16.msra.mxu0 %v2823_v10  ;;  %v912_v10 = vshrl.u32 %v2342_v5, 16  ;;  %v926_v14 = vshrl.u32 %v2344_v8, 16  ;;  %v929_v15 = vshll.u32 %v2344_v8, 16  ;;  %v923_v24 = vrot.slane %v921_v13, 5  ;;  %v2387_v13 = vld [vmem:[%s3188_s4 + $0x2c] sm:$0x1] }
  0x6f   : > { %2649 = vmatprep.subr.bf16.mxu0 %v2828_v35  ;;  %v891_v63 = vrot.slane %v890_v59, 4  ;;  %v960_v54 = vor.u32 %v959_v50, %v956_v49  ;;  %v1095_v8 = vshll.u32 %v2380_v1, 16  ;;  %v2385_v43 = vld [vmem:[%s3188_s4 + $0x24] sm:$0x1]  ;;  %v2390_v50 = vld [vmem:[%s3188_s4 + $0x38] sm:$0xf] }
  0x70   : > { %2612 = vmatpush3.bf16.msra.mxu1 %v2824_v12  ;;  %v914_v16 = vrot.slane %v912_v10, 4  ;;  %v928_v19 = vrot.slane %v926_v14, 4  ;;  %v931_v20 = vrot.slane %v929_v15, 5  ;;  %v1134_v14 = vshrl.u32 %v2386_v9, 16 }
  0x71   : > { %2673 = vmatprep.subr.bf16.mxu1 %v2828_v35  ;;  %1991 = vmatmul.mubr.bf16.vlgmr.msra.gmra.mrb[16].mxu0 %v2826_v38  ;;  %v896_v4 = vsel %vm3208_vm2, %v891_v63, %v895_v60  ;;  %v2349_v38 = vld [vmem:[%s3188_s4 + $0xcc] sm:$0x1]  ;;  %v961_v59 = vrot.slane %v960_v54, 4  ;;  %v2841_v60 = vld [vmem:[%s3188_s4 + $0x108] ss:$8 sps:$4 sm:$0xff]   ;;  %v1123_v54 = vshll.u32 %v2384_v40, 16 }
  0x72   : > { %2650 = vmatpush3.bf16.msra.mxu0 %v2828_v35  ;;  %v2351_v12 = vcombine.low %v896_v4, %v910_v7  ;;  %v918_v23 = vor.u32 %v917_v17, %v914_v16  ;;  %v932_v25 = vor.u32 %v931_v20, %v928_v19  ;;  %v963_v47 = vshll.u32 %v2349_v38, 16  ;;  %v2379_v63 = vld [vmem:[%s3188_s4 + $0xc] sm:$0x1] }
  0x73   : > { %2056 = vmatmul.mubr.bf16.vlgmr.msra.gmra.mrb[16].mxu1 %v2827_v32  ;;  %2651 = vmatprep.subr.bf16.mxu0 %v2829_v39  ;;  %v2836_v32 = vld [vmem:[%s3188_s4 + $0xf8] ss:$8 sps:$4 sm:$0xff]   ;;  %v1081_v4 = vshll.u32 %v2378_v62, 16  ;;  %v1087_v6 = vshll.u32 %v2379_v63, 16  ;;  %v1092_v7 = vshrl.u32 %v2380_v1, 16  ;;  %v1097_v17 = vrot.slane %v1095_v8, 5 }
  0x74   : > { %2681 = vmatpush3.bf16.msra.mxu1 %v2828_v35  ;;  %2063 = vmatprep.mubr.bf16.mxu1 %v2830_v57  ;;  %v919_v28 = vrot.slane %v918_v23, 4  ;;  %v933_v31 = vrot.slane %v932_v25, 4  ;;  %v2347_v35 = vld [vmem:[%s3188_s4 + $0xc4] sm:$0x1]  ;;  %v965_v55 = vrot.slane %v963_v47, 5  ;;  %v1137_v19 = vshll.u32 %v2386_v9, 16 }
  0x75   : > { %2674 = vmatprep.subr.bf16.mxu1 %v2829_v39  ;;  %1998 = vmatprep.mubr.bf16.mxu0 %v2351_v12  ;;  %v949_v42 = vshll.u32 %v2347_v35, 16  ;;  %v2842_v57 = vld [vmem:[%s3188_s4 + $0x38] ss:$8 sps:$4 sm:$0xff]   ;;  %v1083_v11 = vrot.slane %v1081_v4, 5  ;;  %v1089_v15 = vrot.slane %v1087_v6, 5  ;;  %v1094_v16 = vrot.slane %v1092_v7, 4 }
  0x76   : > { %2652 = vmatpush3.bf16.msra.mxu0 %v2829_v39  ;;  %v924_v33 = vsel %vm3208_vm2, %v919_v28, %v923_v24  ;;  %v938_v36 = vsel %vm3208_vm2, %v933_v31, %v937_v27  ;;  %v1136_v23 = vrot.slane %v1134_v14, 4  ;;  %v1143_v24 = vshll.u32 %v2387_v13, 16  ;;  %v2392_v63 = vld [vmem:[%s3188_s4 + $0x40] sm:$0xf] }
  0x77   : > { %2653 = vmatprep.subr.bf16.mxu0 %v2833_v58  ;;  %v2352_v41 = vcombine.low %v924_v33, %v938_v36  ;;  %v951_v53 = vrot.slane %v949_v42, 5  ;;  %v1098_v25 = vor.u32 %v1097_v17, %v1094_v16  ;;  %v1139_v27 = vrot.slane %v1137_v19, 5 }
  0x78   : > { %2682 = vmatpush3.bf16.msra.mxu1 %v2829_v39  ;;  %v940_v39 = vshrl.u32 %v2346_v34, 16  ;;  %v1148_v28 = vshrl.u32 %v2388_v18, 16  ;;  %v2383_v34 = vld [vmem:[%s3188_s4 + $0x1c] sm:$0x1]  ;;  %v1165_v4 = vshll.u32 %v2390_v50, 16 }
  0x79   : > { %2675 = vmatprep.subr.bf16.mxu1 %v2833_v58  ;;  %1999 = vmatmul.mubr.bf16.gmra.mrb[20].mxu0 %v2831_v2  ;;  %v2381_v2 = vld [vmem:[%s3188_s4 + $0x14] sm:$0x1]  ;;  %v1099_v36 = vrot.slane %v1098_v25, 4  ;;  %v1140_v37 = vor.u32 %v1139_v27, %v1136_v23  ;;  %v1115_v49 = vshll.u32 %v2383_v34, 16 }
  0x7a   : > { %2654 = vmatpush3.bf16.msra.mxu0 %v2833_v58  ;;  %v942_v45 = vrot.slane %v940_v39, 4  ;;  %2006 = vmatprep.mubr.bf16.mxu0 %v2352_v41  ;;  %v1101_v12 = vshll.u32 %v2381_v2, 16  ;;  %v1150_v38 = vrot.slane %v1148_v28, 4 }
  0x7b   : > { %2064 = vmatmul.mubr.bf16.gmra.mrb[20].mxu1 %v2832_v0  ;;  %2655 = vmatprep.subr.bf16.mxu0 %v2834_v3  ;;  %v966_v0 = vsel %vm3208_vm2, %v961_v59, %v965_v55  ;;  %v1141_v47 = vrot.slane %v1140_v37, 4  ;;  %v2391_v55 = vld [vmem:[%s3188_s4 + $0x3c] sm:$0x1]  ;;  %v1117_v59 = vrot.slane %v1115_v49, 5 }
  0x7c   : > { %2683 = vmatpush3.bf16.msra.mxu1 %v2833_v58  ;;  %2071 = vmatprep.mubr.bf16.mxu1 %v2835_v21  ;;  %v946_v52 = vor.u32 %v945_v46, %v942_v45  ;;  %v2844_v58 = vld [vmem:[%s3496_s1 + $0x238] sm:$0xff]   ;;  %v1103_v21 = vrot.slane %v1101_v12, 5  ;;  %v1179_v12 = vshll.u32 %v2392_v63, 16 }
  0x7d   : > { %2676 = vmatprep.subr.bf16.mxu1 %v2834_v3 }
  0x7e   : > { %2656 = vmatpush3.bf16.msra.mxu0 %v2834_v3  ;;  %v947_v56 = vrot.slane %v946_v52, 4  ;;  %v1104_v46 = vsel %vm3208_vm2, %v1099_v36, %v1103_v21  ;;  %v1181_v19 = vrot.slane %v1179_v12, 5  ;;  %v2398_v36 = vld [vmem:[%s3497_s2] ss:$0 sm:$0xff] }
  0x7f   : > { %2657 = vmatprep.subr.bf16.mxu0 %v2838_v22 }
  0x80   : > { %2684 = vmatpush3.bf16.msra.mxu1 %v2834_v3  ;;  %v952_v61 = vsel %vm3208_vm2, %v947_v56, %v951_v53  ;;  %v1078_v3 = vshrl.u32 %v2378_v62, 16  ;;  %v1120_v53 = vshrl.u32 %v2384_v40, 16  ;;  %v1125_v62 = vrot.slane %v1123_v54, 5 }
  0x81   : > { %2677 = vmatprep.subr.bf16.mxu1 %v2838_v22  ;;  %2007 = vmatmul.mubr.bf16.gmra.mrb[24].mxu0 %v2836_v32  ;;  %v2353_v5 = vcombine.low %v952_v61, %v966_v0  ;;  %v1145_v32 = vrot.slane %v1143_v24, 5  ;;  %v1162_v0 = vshrl.u32 %v2390_v50, 16 }
  0x82   : > { %2658 = vmatpush3.bf16.msra.mxu0 %v2838_v22  ;;  %v1080_v10 = vrot.slane %v1078_v3, 4  ;;  %v1122_v61 = vrot.slane %v1120_v53, 4  ;;  %v2393_v3 = vld [vmem:[%s3188_s4 + $0x44] sm:$0x1] }
  0x83   : > { %2072 = vmatmul.mubr.bf16.gmra.mrb[24].mxu1 %v2837_v29  ;;  %2659 = vmatprep.subr.bf16.mxu0 %v2839_v30  ;;  %v1151_v29 = vshll.u32 %v2388_v18, 16  ;;  %v1146_v56 = vsel %vm3208_vm2, %v1141_v47, %v1145_v32  ;;  %v1164_v9 = vrot.slane %v1162_v0, 4 }
  0x84   : > { %2685 = vmatpush3.bf16.msra.mxu1 %v2838_v22  ;;  %2079 = vmatprep.mubr.bf16.mxu1 %v2840_v51  ;;  %v1084_v20 = vor.u32 %v1083_v11, %v1080_v10  ;;  %v2389_v22 = vld [vmem:[%s3188_s4 + $0x34] sm:$0x1]  ;;  %v1126_v8 = vor.u32 %v1125_v62, %v1122_v61  ;;  %v1167_v10 = vrot.slane %v1165_v4, 5  ;;  %v1176_v11 = vshrl.u32 %v2392_v63, 16 }
  0x85   : > { %2678 = vmatprep.subr.bf16.mxu1 %v2839_v30  ;;  %2014 = vmatprep.mubr.bf16.mxu0 %v2353_v5  ;;  %v1157_v33 = vshll.u32 %v2389_v22, 16  ;;  %v1153_v39 = vrot.slane %v1151_v29, 5  ;;  %v1171_v5 = vshll.u32 %v2391_v55, 16 }
  0x86   : > { %2660 = vmatpush3.bf16.msra.mxu0 %v2839_v30  ;;  %v1085_v31 = vrot.slane %v1084_v20, 4  ;;  %v1127_v14 = vrot.slane %v1126_v8, 4  ;;  %v1168_v16 = vor.u32 %v1167_v10, %v1164_v9  ;;  %v1178_v18 = vrot.slane %v1176_v11, 4 }
  0x87   : > { %2661 = vmatprep.subr.bf16.mxu0 %v2843_v48  ;;  %v1159_v42 = vrot.slane %v1157_v33, 5  ;;  %v1173_v17 = vrot.slane %v1171_v5, 5 }
  0x88   : > { %2686 = vmatpush3.bf16.msra.mxu1 %v2839_v30  ;;  %v2382_v30 = vld [vmem:[%s3188_s4 + $0x18] sm:$0xf]  ;;  %v1090_v41 = vsel %vm3208_vm2, %v1085_v31, %v1089_v15  ;;  %v1185_v15 = vshll.u32 %v2393_v3, 16  ;;  %v1169_v22 = vrot.slane %v1168_v16, 4  ;;  %v1182_v23 = vor.u32 %v1181_v19, %v1178_v18 }
  0x89   : > { %2679 = vmatprep.subr.bf16.mxu1 %v2843_v48  ;;  %2015 = vmatmul.mubr.bf16.gmra.mrb[28].mxu0 %v2841_v60  ;;  %v1106_v35 = vshrl.u32 %v2382_v30, 16  ;;  %v1109_v45 = vshll.u32 %v2382_v30, 16  ;;  %v2394_v51 = vcombine.low %v1090_v41, %v1104_v46 }
  0x8a   : > { %2662 = vmatpush3.bf16.msra.mxu0 %v2843_v48  ;;  %v1187_v24 = vrot.slane %v1185_v15, 5  ;;  %v1174_v25 = vsel %vm3208_vm2, %v1169_v22, %v1173_v17  ;;  %v1183_v27 = vrot.slane %v1182_v23, 4 }
  0x8b   : > { %2080 = vmatmul.mubr.bf16.gmra.mrb[28].mxu1 %v2842_v57  ;;  %2663 = vmatprep.subr.bf16.mxu0 %v2844_v58  ;;  %v1108_v44 = vrot.slane %v1106_v35, 4  ;;  %v1111_v52 = vrot.slane %v1109_v45, 5 }
  0x8c   : > { %2687 = vmatpush3.bf16.msra.mxu1 %v2843_v48  ;;  %v1154_v48 = vor.u32 %v1153_v39, %v1150_v38  ;;  %2665 = vmatprep.mubr.bf16.mxu0 %v2394_v51  ;;  %v1188_v28 = vsel %vm3208_vm2, %v1183_v27, %v1187_v24 }
  0x8d   : > { %2680 = vmatprep.subr.bf16.mxu1 %v2844_v58  ;;  %v1112_v60 = vor.u32 %v1111_v52, %v1108_v44  ;;  %v2397_v29 = vcombine.low %v1174_v25, %v1188_v28 }
  0x8e   : > { %2664 = vmatpush3.bf16.msra.mxu0 %v2844_v58  ;;  %v1155_v57 = vrot.slane %v1154_v48, 4 }
  0x8f   : > { %v1113_v7 = vrot.slane %v1112_v60, 4 }
  0x90   : > { %2688 = vmatpush3.bf16.msra.mxu1 %v2844_v58  ;;  %v1129_v58 = vshll.u32 %v2385_v43, 16  ;;  %v1160_v1 = vsel %vm3208_vm2, %v1155_v57, %v1159_v42 }
  0x91   : > { %v2396_v6 = vcombine.low %v1146_v56, %v1160_v1  ;;  %v1118_v13 = vsel %vm3208_vm2, %v1113_v7, %v1117_v59 }
  0x92   : > { %v1131_v2 = vrot.slane %v1129_v58, 5 }
  0x93   : > { %2669 = vmatprep.mubr.bf16.mxu1 %v2396_v6 }
  0x94   : > { %v1132_v20 = vsel %vm3208_vm2, %v1127_v14, %v1131_v2  ;;  %2670 = vmatmul.mubr.bf16.vlgmr.msra.gmra.mrb[32].mxu1 %v2397_v29 }
  0x95   : > { %v2395_v21 = vcombine.low %v1118_v13, %v1132_v20 }
  0x97   : > { %2666 = vmatmul.mubr.bf16.vlgmr.msra.gmra.mrb[32].mxu0 %v2395_v21 }
 0x124   : > { %v2493_v30 = vpop.f32.mrb[0].mxu0 }
 0x125   : > { %v2494_v31 = vpop.f32.mrb[1].mxu0  ;;  %v2533_v37 = vpop.f32.mrb[0].mxu1 }
 0x126   : > { %v2495_v32 = vadd.f32 %v2494_v31, %v2493_v30  ;;  %v2496_v33 = vpop.f32.mrb[2].mxu0  ;;  %v2534_v39 = vpop.f32.mrb[1].mxu1 }
 0x127   : > { %v2497_v34 = vpop.f32.mrb[3].mxu0  ;;  %v2535_v40 = vadd.f32 %v2534_v39, %v2533_v37  ;;  %v2536_v41 = vpop.f32.mrb[2].mxu1 }
 0x128   : > { %v2498_v35 = vadd.f32 %v2497_v34, %v2496_v33  ;;  %v1863_v38 = vadd.f32 %v2495_v32, %v2398_v36  ;;  %v2537_v43 = vpop.f32.mrb[3].mxu1 }
 0x129   : > { %v2538_v46 = vadd.f32 %v2537_v43, %v2536_v41 }
 0x12a   : > { %v1866_v42 = vadd.f32 %v2498_v35, %v2398_v36  ;;  %v1928_v45 = vadd.f32 %v2535_v40, %v1863_v38 }
 0x12c   : > { %v2499_v26 = vpop.f32.mrb[4].mxu0  ;;  %v1931_v50 = vadd.f32 %v2538_v46, %v1866_v42 }
 0x12d   : > { %v2500_v44 = vpop.f32.mrb[5].mxu0  ;;  %v2539_v52 = vpop.f32.mrb[4].mxu1 }
 0x12e   : > { %v2501_v47 = vadd.f32 %v2500_v44, %v2499_v26  ;;  %v2502_v48 = vpop.f32.mrb[6].mxu0  ;;  %v2540_v54 = vpop.f32.mrb[5].mxu1 }
 0x12f   : > { %v2503_v49 = vpop.f32.mrb[7].mxu0  ;;  %v2541_v55 = vadd.f32 %v2540_v54, %v2539_v52  ;;  %v2542_v56 = vpop.f32.mrb[6].mxu1 }
 0x130   : > { %v2504_v51 = vadd.f32 %v2503_v49, %v2502_v48  ;;  %v1871_v53 = vadd.f32 %v2501_v47, %v2398_v36  ;;  %v2543_v58 = vpop.f32.mrb[7].mxu1 }
 0x131   : > { %v2544_v62 = vadd.f32 %v2543_v58, %v2542_v56 }
 0x132   : > { %v1874_v57 = vadd.f32 %v2504_v51, %v2398_v36  ;;  %v1936_v61 = vadd.f32 %v2541_v55, %v1871_v53 }
 0x134   : > { %v2505_v59 = vpop.f32.mrb[8].mxu0  ;;  %v1939_v2 = vadd.f32 %v2544_v62, %v1874_v57 }
 0x135   : > { %v2506_v60 = vpop.f32.mrb[9].mxu0  ;;  %v2545_v4 = vpop.f32.mrb[8].mxu1 }
 0x136   : > { %v2507_v63 = vadd.f32 %v2506_v60, %v2505_v59  ;;  %v2508_v0 = vpop.f32.mrb[10].mxu0  ;;  %v2546_v6 = vpop.f32.mrb[9].mxu1 }
 0x137   : > { %v2509_v1 = vpop.f32.mrb[11].mxu0  ;;  %v2547_v7 = vadd.f32 %v2546_v6, %v2545_v4  ;;  %v2548_v8 = vpop.f32.mrb[10].mxu1 }
 0x138   : > { %v2510_v3 = vadd.f32 %v2509_v1, %v2508_v0  ;;  %v1879_v5 = vadd.f32 %v2507_v63, %v2398_v36  ;;  %v2549_v11 = vpop.f32.mrb[11].mxu1 }
 0x139   : > { %v2550_v14 = vadd.f32 %v2549_v11, %v2548_v8 }
 0x13a   : > { %v1882_v9 = vadd.f32 %v2510_v3, %v2398_v36  ;;  %v1944_v13 = vadd.f32 %v2547_v7, %v1879_v5 }
 0x13c   : > { %v2511_v10 = vpop.f32.mrb[12].mxu0  ;;  %v1947_v18 = vadd.f32 %v2550_v14, %v1882_v9 }
 0x13d   : > { %v2512_v12 = vpop.f32.mrb[13].mxu0  ;;  %v2551_v20 = vpop.f32.mrb[12].mxu1 }
 0x13e   : > { %v2513_v15 = vadd.f32 %v2512_v12, %v2511_v10  ;;  %v2514_v16 = vpop.f32.mrb[14].mxu0  ;;  %v2552_v22 = vpop.f32.mrb[13].mxu1 }
 0x13f   : > { %v2515_v17 = vpop.f32.mrb[15].mxu0  ;;  %v2553_v23 = vadd.f32 %v2552_v22, %v2551_v20  ;;  %v2554_v24 = vpop.f32.mrb[14].mxu1 }
 0x140   : > { %v2516_v19 = vadd.f32 %v2515_v17, %v2514_v16  ;;  %v1887_v21 = vadd.f32 %v2513_v15, %v2398_v36  ;;  %v2555_v27 = vpop.f32.mrb[15].mxu1 }
 0x141   : > { %v2556_v29 = vadd.f32 %v2555_v27, %v2554_v24 }
 0x142   : > { %v1890_v25 = vadd.f32 %v2516_v19, %v2398_v36  ;;  %v1952_v28 = vadd.f32 %v2553_v23, %v1887_v21 }
 0x144   : > { %v1955_v30 = vadd.f32 %v2556_v29, %v1890_v25  ;;  %v2573_v37 = vpop.f32.mrb[16].mxu0 }
 0x145   : > { %v2574_v39 = vpop.f32.mrb[17].mxu0 }
 0x146   : > { %v2613_v31 = vpop.f32.mrb[16].mxu1  ;;  %v2575_v40 = vadd.f32 %v2574_v39, %v2573_v37  ;;  %v2576_v41 = vpop.f32.mrb[18].mxu0 }
 0x147   : > { %v2614_v32 = vpop.f32.mrb[17].mxu1  ;;  %v2577_v42 = vpop.f32.mrb[19].mxu0 }
 0x148   : > { %v2615_v33 = vadd.f32 %v2614_v32, %v2613_v31  ;;  %v2616_v34 = vpop.f32.mrb[18].mxu1  ;;  %v1993_v26 = vadd.f32 %v2575_v40, %v1928_v45  ;;  %v2578_v43 = vadd.f32 %v2577_v42, %v2576_v41 }
 0x149   : > { %v2617_v35 = vpop.f32.mrb[19].mxu1 }
 0x14a   : > { %v2618_v38 = vadd.f32 %v2617_v35, %v2616_v34  ;;  %v1996_v36 = vadd.f32 %v2578_v43, %v1931_v50  ;;  %v2058_v49 = vadd.f32 %v2615_v33, %v1993_v26 }
 0x14c   : > { %v2579_v52 = vpop.f32.mrb[20].mxu0  ;;  %v2061_v54 = vadd.f32 %v2618_v38, %v1996_v36 }
 0x14d   : > { %v2580_v55 = vpop.f32.mrb[21].mxu0 }
 0x14e   : > { %v2619_v44 = vpop.f32.mrb[20].mxu1  ;;  %v2581_v56 = vadd.f32 %v2580_v55, %v2579_v52  ;;  %v2582_v57 = vpop.f32.mrb[22].mxu0 }
 0x14f   : > { %v2620_v46 = vpop.f32.mrb[21].mxu1  ;;  %v2583_v59 = vpop.f32.mrb[23].mxu0 }
 0x150   : > { %v2621_v47 = vadd.f32 %v2620_v46, %v2619_v44  ;;  %v2622_v48 = vpop.f32.mrb[22].mxu1  ;;  %v2001_v58 = vadd.f32 %v2581_v56, %v1936_v61  ;;  %v2584_v60 = vadd.f32 %v2583_v59, %v2582_v57 }
 0x151   : > { %v2623_v51 = vpop.f32.mrb[23].mxu1 }
 0x152   : > { %v2624_v53 = vadd.f32 %v2623_v51, %v2622_v48  ;;  %v2004_v45 = vadd.f32 %v2584_v60, %v1939_v2  ;;  %v2066_v3 = vadd.f32 %v2621_v47, %v2001_v58 }
 0x154   : > { %v2069_v5 = vadd.f32 %v2624_v53, %v2004_v45  ;;  %v2585_v6 = vpop.f32.mrb[24].mxu0 }
 0x155   : > { %v2586_v7 = vpop.f32.mrb[25].mxu0 }
 0x156   : > { %v2625_v62 = vpop.f32.mrb[24].mxu1  ;;  %v2587_v8 = vadd.f32 %v2586_v7, %v2585_v6  ;;  %v2588_v9 = vpop.f32.mrb[26].mxu0 }
 0x157   : > { %v2626_v63 = vpop.f32.mrb[25].mxu1  ;;  %v2589_v10 = vpop.f32.mrb[27].mxu0 }
 0x158   : > { %v2627_v0 = vadd.f32 %v2626_v63, %v2625_v62  ;;  %v2628_v1 = vpop.f32.mrb[26].mxu1  ;;  %v2009_v11 = vadd.f32 %v2587_v8, %v1944_v13  ;;  %v2590_v12 = vadd.f32 %v2589_v10, %v2588_v9 }
 0x159   : > { %v2629_v50 = vpop.f32.mrb[27].mxu1 }
 0x15a   : > { %v2630_v4 = vadd.f32 %v2629_v50, %v2628_v1  ;;  %v2012_v61 = vadd.f32 %v2590_v12, %v1947_v18  ;;  %v2074_v2 = vadd.f32 %v2627_v0, %v2009_v11 }
 0x15c   : > { %v2077_v21 = vadd.f32 %v2630_v4, %v2012_v61  ;;  %v2591_v22 = vpop.f32.mrb[28].mxu0 }
 0x15d   : > { %v2592_v23 = vpop.f32.mrb[29].mxu0 }
 0x15e   : > { %v2631_v14 = vpop.f32.mrb[28].mxu1  ;;  %v2593_v24 = vadd.f32 %v2592_v23, %v2591_v22  ;;  %v2594_v25 = vpop.f32.mrb[30].mxu0 }
 0x15f   : > { %v2632_v15 = vpop.f32.mrb[29].mxu1  ;;  %v2595_v27 = vpop.f32.mrb[31].mxu0 }
 0x160   : > { %v2633_v16 = vadd.f32 %v2632_v15, %v2631_v14  ;;  %v2634_v17 = vpop.f32.mrb[30].mxu1  ;;  %v2017_v29 = vadd.f32 %v2593_v24, %v1952_v28  ;;  %v2596_v31 = vadd.f32 %v2595_v27, %v2594_v25 }
 0x161   : > { %v2635_v19 = vpop.f32.mrb[31].mxu1 }
 0x162   : > { %v2636_v20 = vadd.f32 %v2635_v19, %v2634_v17  ;;  %v2020_v32 = vadd.f32 %v2596_v31, %v1955_v30  ;;  %v2082_v13 = vadd.f32 %v2633_v16, %v2017_v29 }
 0x164   : > { %v2085_v33 = vadd.f32 %v2636_v20, %v2020_v32 }
 0x167   : > { %v2671_v42 = vpop.f32.mrb[32].mxu1 }
 0x168   : > { %v2147_v28 = vadd.f32 %v2671_v42, %v2082_v13  ;;  %v2138_v30 = vpop.f32.mrb[33].mxu1 }
 0x169   : > { %v2139_v26 = vadd.f32 %v2138_v30, %v2074_v2  ;;  %v2672_v43 = vpop.f32.mrb[34].mxu1 }
 0x16a   : > { %v2667_v18 = vpop.f32.mrb[32].mxu0  ;;  %2159 = vst [vmem:[%s532_s19 + $0x30] sm:$0xff] %v2147_v28  ;;  %v2150_v44 = vadd.f32 %v2672_v43, %v2085_v33  ;;  %v2141_v46 = vpop.f32.mrb[35].mxu1 }
 0x16b   : > { %v2131_v34 = vadd.f32 %v2667_v18, %v2066_v3  ;;  %v2122_v35 = vpop.f32.mrb[33].mxu0  ;;  %2157 = vst [vmem:[%s532_s19 + $0x20] sm:$0xff] %v2139_v26  ;;  %v2142_v36 = vadd.f32 %v2141_v46, %v2077_v21 }
 0x16c   : > { %v2123_v37 = vadd.f32 %v2122_v35, %v2058_v49  ;;  %v2668_v38 = vpop.f32.mrb[34].mxu0  ;;  %2160 = vst [vmem:[%s532_s19 + $0x38] sm:$0xff] %v2150_v44 }
 0x16d   : > { %2155 = vst [vmem:[%s532_s19 + $0x10] sm:$0xff] %v2131_v34  ;;  %v2134_v39 = vadd.f32 %v2668_v38, %v2069_v5  ;;  %v2125_v40 = vpop.f32.mrb[35].mxu0  ;;  %2158 = vst [vmem:[%s532_s19 + $0x28] sm:$0xff] %v2142_v36 }
 0x16e   : > { %2153 = vst [vmem:[%s532_s19] sm:$0xff] %v2123_v37  ;;  %v2126_v41 = vadd.f32 %v2125_v40, %v2061_v54 }
 0x16f   : > { %2156 = vst [vmem:[%s532_s19 + $0x18] sm:$0xff] %v2134_v39 }
 0x170   : > { %2154 = vst [vmem:[%s532_s19 + $0x8] sm:$0xff] %v2126_v41 }
 0x171   : > { %2858 = shalt.err (!%p2855_p7)
}
 0x172   : > { %s2859_s8 = scalar_lea.hbm %s3444_s28, 1024  ;;  %s2863_s4 = scalar_lea.hbm %s3498_s3, 2048 }
 0x173   : > { %p2860_p8 = scmp.ne.s32.totalorder %s3444_s28, %s2859_s8  ;;  %p2864_p13 = scmp.lt.u32.totalorder %s3444_s28, %s3498_s3 }
 0x174   : > { %p2865_p0 = scmp.lt.u32.totalorder %s2863_s4, %s2859_s8  ;;  %p2867_p2 = scmp.lt.u32.totalorder %s2859_s8, %s3444_s28 }
 0x175   : > { %p2861_p11 = pnand %p2860_p8, %p2987_p5 }
 0x176   : > { %p2866_p1 = por %p2865_p0, %p2864_p13 }
 0x177   : > { %p2862_p12 = pneg %p2861_p11 }
 0x178   : > { %p2868_p3 = por %p2867_p2, %p2866_p1 }
 0x17a   : > { %p2869_p4 = pnand %p2868_p3, %p2862_p12 }
 0x17c   : > { %2872 = shalt.err (!%p2869_p4)
}
 0x17d   : > { %s2926_s19 = smov 128   ;;  %s2927_s21 = smov 8  }
 0x17e   : > { %2692 = dma.vmem_to_hbm [thread:$0]  (%p2987_p5), %s3446_s23, 1024, %s3444_s28, %s2162_s15, %s2926_s19, %s2926_s19, %s2927_s21  }
 0x17f PF: > { %s2191_s26 = sand.u32 1, %s2903_s12   ;;  %p2695_p6 = pnand %p2286_p10, %p2998_p9 }
 0x180   : > { %s2192_s27 = scalar_lea.sflag [#allocation5], %s2191_s26 }
 0x181   : > { %2898 = dma.done.wait (!%p2695_p6), %s2192_s27, 1024  }
 0x182   : > { %2900 = vsyncadd (!%p2695_p6), %s2192_s27, 4294966272  ;;  %s16_s17 = sadd.s32 1, %s2923_s17   ;;  %s3503_s12 = smov %s2907_s13 }
 0x183   : > { %p13_p7 = scmp.ge.s32.totalorder %s16_s17, 4   ;;  %s3504_s13 = smov %s2911_s14 }
 0x184   : > { %s3505_s14 = smov %s2996_s24  ;;  %s3506_s15 = smov %s2919_s16 }
 0x185   : > { %s3507_s16 = smov %s3509_s20  ;;  %15 = sbr.rel (!%p13_p7) target bundleno = 4 (0x4), region = 124 }
 0x18c   :  { %2197 = vsyncpa [#allocation5], 1 }
 0x18d   :  { %2199 = vsyncpa [#allocation5 + $0x1], 1 }

</bundles_post_ra>
